<compile_context>
chip_gen: v6e
topology: v6e:2x2x1
jax: 0.10.0
libtpu: 0.0.40
codegen_flags: <defaults>
</compile_context>

<pallas_src>
import functools
import math

import jax
import jax.numpy as jnp
from jax.experimental import pallas as pl
from jax.experimental.pallas import tpu as pltpu

# ---------------- model config (small, structure-preserving) ----------------
B = 2            # batch
S = 16           # sequence length (cfg.max_len analogue)
M = B * S        # rows folded into one matmul M dimension
VOCAB = 128      # vocab size (synthetic)
TYPE_VOCAB = 2
MAX_POS = 32
D_MODEL = 128    # stand-in for 768
N_HEADS = 4
HEAD_DIM = D_MODEL // N_HEADS
D_FF = 256       # stand-in for 3072
N_LAYERS = 2     # stand-in for 12
HIDDEN = 64      # stand-in for cfg.hidden_size=384
NUM_TAGS = 13    # len(cfg.entities)
NUM_TAGS_PAD = 128   # lane-dense padded logits width
LN_EPS = 1e-12

SELU_SCALE = 1.0507009873554805
SELU_ALPHA = 1.6732632423543772

MISC_ROWS = 8    # packed per-layer bias / LayerNorm parameter rows


# ------------------------------ kernel helpers --------------------------------
def _layernorm(x, g, b):
    mu = jnp.mean(x, axis=-1, keepdims=True)
    xc = x - mu
    var = jnp.mean(xc * xc, axis=-1, keepdims=True)
    return xc * jax.lax.rsqrt(var + LN_EPS) * g + b


# ------------------------------ fused Pallas kernel ----------------------------
def fused_model_kernel(x_emb_ref, mask_ref, embg_ref, embb_ref,
                       wqkv_ref, wo_ref, wi_ref, wf_ref, misc_ref,
                       hw1_ref, hb1_ref, hw2_ref,
                       o_ref, x_scr, *, scale):
    # grid = (N_LAYERS,): one grid step == one encoder layer; activation is
    # carried in the VMEM scratch x_scr across steps.
    l = pl.program_id(0)

    @pl.when(l == 0)
    def _():
        # Embedding LayerNorm fused into the first grid step.
        x_scr[...] = _layernorm(x_emb_ref[...], embg_ref[...], embb_ref[...])

    x = x_scr[...]                                   # (M, D) f32, VMEM-resident
    mask = mask_ref[...]                             # (M, M) additive bias

    # Packed per-layer bias / LN rows: (8, 3D) f32
    misc = misc_ref[...]
    bqkv = misc[0:1, :]                              # (1, 3D)
    bo = misc[1:2, :D_MODEL]
    ln1g = misc[2:3, :D_MODEL]
    ln1b = misc[3:4, :D_MODEL]
    bi = misc[4:5, :D_FF]
    bf_ = misc[5:6, :D_MODEL]
    ln2g = misc[6:7, :D_MODEL]
    ln2b = misc[7:8, :D_MODEL]

    # --- fused QKV projection: single (M, D) x (D, 3D) bf16 matmul ---
    x_bf = x.astype(jnp.bfloat16)
    qkv = jnp.dot(x_bf, wqkv_ref[...],
                  preferred_element_type=jnp.float32) + bqkv   # (M, 3D) f32

    # --- per-head attention over all B*S rows at once; cross-batch + padding
    #     handled by the precomputed block-diagonal additive mask.  The output
    #     projection is accumulated per head (no lane concatenate). ---
    wo = wo_ref[...]                                 # (D, D) bf16
    attn = None
    for h in range(N_HEADS):
        q_h = qkv[:, h * HEAD_DIM:(h + 1) * HEAD_DIM].astype(jnp.bfloat16)
        k_h = qkv[:, D_MODEL + h * HEAD_DIM:
                  D_MODEL + (h + 1) * HEAD_DIM].astype(jnp.bfloat16)
        v_h = qkv[:, 2 * D_MODEL + h * HEAD_DIM:
                  2 * D_MODEL + (h + 1) * HEAD_DIM].astype(jnp.bfloat16)
        s = jax.lax.dot_general(q_h, k_h, (((1,), (1,)), ((), ())),
                                preferred_element_type=jnp.float32) * scale
        s = s + mask                                 # (M, M)
        mrow = jnp.max(s, axis=-1, keepdims=True)
        p = jnp.exp(s - mrow)
        denom = jnp.sum(p, axis=-1, keepdims=True)
        p = p * pl.reciprocal(denom, approx=True)    # EUP reciprocal
        ctx_h = jnp.dot(p.astype(jnp.bfloat16), v_h,
                        preferred_element_type=jnp.float32)    # (M, HD)
        part = jnp.dot(ctx_h.astype(jnp.bfloat16),
                       wo[h * HEAD_DIM:(h + 1) * HEAD_DIM, :],
                       preferred_element_type=jnp.float32)     # (M, D)
        attn = part if attn is None else attn + part

    attn_out = attn + bo
    h1 = _layernorm(attn_out + x, ln1g, ln1b)

    # --- FFN + add & LayerNorm ---
    ff = jnp.dot(h1.astype(jnp.bfloat16), wi_ref[...],
                 preferred_element_type=jnp.float32) + bi
    # TODO(synk): HF BERT uses erf-based GELU; tanh approximation used here.
    ff = jax.nn.gelu(ff, approximate=True)
    ff_out = jnp.dot(ff.astype(jnp.bfloat16), wf_ref[...],
                     preferred_element_type=jnp.float32) + bf_
    h2 = _layernorm(ff_out + h1, ln2g, ln2b)
    x_scr[...] = h2

    @pl.when(l == pl.num_programs(0) - 1)
    def _():
        # dropout(p=0.1) is identity in eval; head fused into the last step:
        # Linear(768->hidden) + SELU + Linear(hidden->num_tags padded to 128).
        hh = jnp.dot(h2.astype(jnp.bfloat16), hw1_ref[...],
                     preferred_element_type=jnp.float32) + hb1_ref[...]
        hh = SELU_SCALE * jnp.where(
            hh > 0, hh, SELU_ALPHA * (jnp.exp(jnp.minimum(hh, 0.0)) - 1.0))
        o_ref[...] = jnp.dot(hh.astype(jnp.bfloat16), hw2_ref[...],
                             preferred_element_type=jnp.float32
                             ).astype(o_ref.dtype)


# ------------------------------ Pallas wrapper --------------------------------
def fused_entity_forward(params, x_emb2d, mask2d):
    kernel = functools.partial(fused_model_kernel,
                               scale=1.0 / math.sqrt(HEAD_DIM))
    const2 = lambda l: (0, 0)

    def layer_spec(shape):
        # Per-layer stacked weight: leading layer axis squeezed out in-kernel.
        return pl.BlockSpec((None,) + shape, lambda l: (l, 0, 0))

    return pl.pallas_call(
        kernel,
        out_shape=jax.ShapeDtypeStruct((M, NUM_TAGS_PAD), jnp.float32),
        grid=(N_LAYERS,),
        in_specs=[
            pl.BlockSpec((M, D_MODEL), const2),              # embeddings (pre-LN)
            pl.BlockSpec((M, M), const2),                    # attention bias mask
            pl.BlockSpec((1, D_MODEL), const2),              # emb LN gamma
            pl.BlockSpec((1, D_MODEL), const2),              # emb LN beta
            layer_spec((D_MODEL, 3 * D_MODEL)),              # wqkv stacked (bf16)
            layer_spec((D_MODEL, D_MODEL)),                  # wo stacked (bf16)
            layer_spec((D_MODEL, D_FF)),                     # wi stacked (bf16)
            layer_spec((D_FF, D_MODEL)),                     # wf stacked (bf16)
            layer_spec((MISC_ROWS, 3 * D_MODEL)),            # packed bias/LN rows
            pl.BlockSpec((D_MODEL, HIDDEN), const2),         # head w1 (bf16)
            pl.BlockSpec((1, HIDDEN), const2),               # head b1
            pl.BlockSpec((HIDDEN, NUM_TAGS_PAD), const2),    # head w2 padded
        ],
        out_specs=pl.BlockSpec((M, NUM_TAGS_PAD), const2),
        scratch_shapes=[pltpu.VMEM((M, D_MODEL), jnp.float32)],
        compiler_params=pltpu.CompilerParams(
            dimension_semantics=("arbitrary",)),
    )(x_emb2d, mask2d,
      params["emb_ln_g"], params["emb_ln_b"],
      params["wqkv"], params["wo"], params["wi"], params["wf"], params["misc"],
      params["head_w1"], params["head_b1"], params["head_w2"])


# ------------------------------ parameter init --------------------------------
def init_params(key):
    def nrm(k, shape, std=0.02):
        return (std * jax.random.normal(k, shape)).astype(jnp.float32)

    keys = jax.random.split(key, 6 + N_LAYERS)

    # Head second linear: (HIDDEN, NUM_TAGS) zero-padded to lane-dense 128.
    w2 = nrm(keys[4], (HIDDEN, NUM_TAGS))
    w2_pad = jnp.zeros((HIDDEN, NUM_TAGS_PAD),
                       jnp.float32).at[:, :NUM_TAGS].set(w2)

    wqkv_l, wo_l, wi_l, wf_l, misc_l = [], [], [], [], []
    for l in range(N_LAYERS):
        lk = jax.random.split(keys[6 + l], 6)
        wq = nrm(lk[0], (D_MODEL, D_MODEL))
        wk = nrm(lk[1], (D_MODEL, D_MODEL))
        wv = nrm(lk[2], (D_MODEL, D_MODEL))
        wqkv_l.append(jnp.concatenate([wq, wk, wv], axis=1).astype(jnp.bfloat16))
        wo_l.append(nrm(lk[3], (D_MODEL, D_MODEL)).astype(jnp.bfloat16))
        wi_l.append(nrm(lk[4], (D_MODEL, D_FF)).astype(jnp.bfloat16))
        wf_l.append(nrm(lk[5], (D_FF, D_MODEL)).astype(jnp.bfloat16))
        # Packed rows: 0 bqkv | 1 bo | 2 ln1_g | 3 ln1_b | 4 bi | 5 bf
        #              6 ln2_g | 7 ln2_b   (biases zero, LN gammas one)
        misc = jnp.zeros((MISC_ROWS, 3 * D_MODEL), jnp.float32)
        misc = misc.at[2, :D_MODEL].set(1.0)
        misc = misc.at[6, :D_MODEL].set(1.0)
        misc_l.append(misc)

    return {
        "word_emb": nrm(keys[0], (VOCAB, D_MODEL)),
        "pos_emb": nrm(keys[1], (MAX_POS, D_MODEL)),
        "type_emb": nrm(keys[2], (TYPE_VOCAB, D_MODEL)),
        "emb_ln_g": jnp.ones((1, D_MODEL), jnp.float32),
        "emb_ln_b": jnp.zeros((1, D_MODEL), jnp.float32),
        "head_w1": nrm(keys[3], (D_MODEL, HIDDEN)).astype(jnp.bfloat16),
        "head_b1": jnp.zeros((1, HIDDEN), jnp.float32),
        "head_w2": w2_pad.astype(jnp.bfloat16),
        "wqkv": jnp.stack(wqkv_l),
        "wo": jnp.stack(wo_l),
        "wi": jnp.stack(wi_l),
        "wf": jnp.stack(wf_l),
        "misc": jnp.stack(misc_l),
    }


# ------------------------------ forward (glue) ---------------------------------
def entity_model_forward(params, input_ids, attention_mask, token_type_ids,
                         labels=None):
    Bq, Sq = input_ids.shape
    Mq = Bq * Sq
    assert Bq == B and Sq == S

    # --- embeddings (gather stays in JAX; LayerNorm fused into the kernel) ---
    positions = jnp.arange(Sq, dtype=jnp.int32)
    emb = (jnp.take(params["word_emb"], input_ids, axis=0)
           + jnp.take(params["pos_emb"], positions, axis=0)[None, :, :]
           + jnp.take(params["type_emb"], token_type_ids, axis=0))
    x2d = emb.reshape(Mq, D_MODEL).astype(jnp.float32)

    # Additive attention bias over all B*S rows at once:
    # block-diagonal in batch (batch folded into M) + key padding (-10000.0).
    batch_idx = jnp.repeat(jnp.arange(Bq, dtype=jnp.int32), Sq)
    key_valid = attention_mask.reshape(Mq).astype(jnp.int32)
    ok = (batch_idx[:, None] == batch_idx[None, :]) & (key_valid[None, :] == 1)
    mask2d = jnp.where(ok, 0.0, -10000.0).astype(jnp.float32)

    # --- one fused Pallas call: emb LN + N_LAYERS encoder layers + head ---
    logits_pad = fused_entity_forward(params, x2d, mask2d)
    logits = logits_pad[:, :NUM_TAGS].reshape(Bq, Sq, NUM_TAGS)

    loss = None
    if labels is not None:
        # masked cross-entropy (ignore positions where attention_mask == 0)
        flat_logits = logits.reshape(-1, NUM_TAGS)
        flat_labels = labels.reshape(-1)
        flat_mask = attention_mask.reshape(-1).astype(jnp.float32)
        logp = jax.nn.log_softmax(flat_logits, axis=-1)
        nll = -jnp.take_along_axis(logp, flat_labels[:, None], axis=-1)[:, 0]
        loss = jnp.sum(nll * flat_mask) / jnp.maximum(jnp.sum(flat_mask), 1.0)
    return logits, loss


# ------------------------------------ main --------------------------------------
if __name__ == "__main__":
    key = jax.random.PRNGKey(0)
    pkey, ikey, mkey = jax.random.split(key, 3)

    params = init_params(pkey)

    input_ids = jax.random.randint(ikey, (B, S), 0, VOCAB, dtype=jnp.int32)
    attention_mask = jnp.concatenate(
        [jnp.ones((B, S - 3), jnp.int32), jnp.zeros((B, 3), jnp.int32)], axis=1)
    token_type_ids = jnp.zeros((B, S), jnp.int32)

    logits, loss = entity_model_forward(params, input_ids, attention_mask,
                                        token_type_ids, labels=None)
    logits = jax.block_until_ready(logits)
    assert logits.shape == (B, S, NUM_TAGS)
    assert loss is None
    print("KERNEL_OK")
</pallas_src>

<mosaic_0001>
module attributes {stable_mosaic.version = 11 : i64} {
  func.func @fused_model_kernel(%arg0: i32, %arg1: memref<32x128xf32, #tpu.memory_space<vmem>>, %arg2: memref<32x32xf32, #tpu.memory_space<vmem>>, %arg3: memref<1x128xf32, #tpu.memory_space<vmem>>, %arg4: memref<1x128xf32, #tpu.memory_space<vmem>>, %arg5: memref<1x128x384xbf16, #tpu.memory_space<vmem>>, %arg6: memref<1x128x128xbf16, #tpu.memory_space<vmem>>, %arg7: memref<1x128x256xbf16, #tpu.memory_space<vmem>>, %arg8: memref<1x256x128xbf16, #tpu.memory_space<vmem>>, %arg9: memref<1x8x384xf32, #tpu.memory_space<vmem>>, %arg10: memref<128x64xbf16, #tpu.memory_space<vmem>>, %arg11: memref<1x64xf32, #tpu.memory_space<vmem>>, %arg12: memref<64x128xbf16, #tpu.memory_space<vmem>>, %arg13: memref<32x128xf32, #tpu.memory_space<vmem>>, %arg14: memref<32x128xf32, #tpu.memory_space<vmem>>) attributes {dimension_semantics = [#tpu.dimension_semantics<arbitrary>], iteration_bounds = array<i64: 2>, scalar_prefetch = 0 : i64, scratch_operands = 1 : i64, tpu.core_type = #tpu.core_type<tc>, window_params = [{pipeline_mode = #tpu.pipeline_mode<synchronous>, transform_indices = @transform_0, window_bounds = array<i64: 32, 128>}, {pipeline_mode = #tpu.pipeline_mode<synchronous>, transform_indices = @transform_1, window_bounds = array<i64: 32, 32>}, {pipeline_mode = #tpu.pipeline_mode<synchronous>, transform_indices = @transform_2, window_bounds = array<i64: 1, 128>}, {pipeline_mode = #tpu.pipeline_mode<synchronous>, transform_indices = @transform_3, window_bounds = array<i64: 1, 128>}, {transform_indices = @transform_4, window_bounds = array<i64: 1, 128, 384>}, {transform_indices = @transform_5, window_bounds = array<i64: 1, 128, 128>}, {transform_indices = @transform_6, window_bounds = array<i64: 1, 128, 256>}, {transform_indices = @transform_7, window_bounds = array<i64: 1, 256, 128>}, {transform_indices = @transform_8, window_bounds = array<i64: 1, 8, 384>}, {pipeline_mode = #tpu.pipeline_mode<synchronous>, transform_indices = @transform_9, window_bounds = array<i64: 128, 64>}, {pipeline_mode = #tpu.pipeline_mode<synchronous>, transform_indices = @transform_10, window_bounds = array<i64: 1, 64>}, {pipeline_mode = #tpu.pipeline_mode<synchronous>, transform_indices = @transform_11, window_bounds = array<i64: 64, 128>}, {pipeline_mode = #tpu.pipeline_mode<synchronous>, transform_indices = @transform_12, window_bounds = array<i64: 32, 128>}]} {
    %c0_i32 = arith.constant 0 : i32
    %0 = arith.cmpi eq, %arg0, %c0_i32 : i32
    %1 = arith.extui %0 : i1 to i32
    %c0_i32_0 = arith.constant 0 : i32
    %2 = arith.cmpi ne, %1, %c0_i32_0 : i32
    scf.if %2 {
      %c0_62 = arith.constant 0 : index
      %c0_63 = arith.constant 0 : index
      %199 = vector.load %arg1[%c0_62, %c0_63] : memref<32x128xf32, #tpu.memory_space<vmem>>, vector<32x128xf32>
      %c0_64 = arith.constant 0 : index
      %c0_65 = arith.constant 0 : index
      %200 = vector.load %arg3[%c0_64, %c0_65] : memref<1x128xf32, #tpu.memory_space<vmem>>, vector<1x128xf32>
      %c0_66 = arith.constant 0 : index
      %c0_67 = arith.constant 0 : index
      %201 = vector.load %arg4[%c0_66, %c0_67] : memref<1x128xf32, #tpu.memory_space<vmem>>, vector<1x128xf32>
      %cst_68 = arith.constant dense<0.000000e+00> : vector<32xf32>
      %202 = vector.multi_reduction <add>, %199, %cst_68 [1] : vector<32x128xf32> to vector<32xf32>
      %203 = vector.shape_cast %202 : vector<32xf32> to vector<32x1xf32>
      %cst_69 = arith.constant 1.280000e+02 : f32
      %204 = vector.broadcast %cst_69 : f32 to vector<32x1xf32>
      %205 = arith.divf %203, %204 : vector<32x1xf32>
      %206 = vector.broadcast %205 : vector<32x1xf32> to vector<32x128xf32>
      %207 = arith.subf %199, %206 : vector<32x128xf32>
      %208 = arith.mulf %207, %207 : vector<32x128xf32>
      %cst_70 = arith.constant dense<0.000000e+00> : vector<32xf32>
      %209 = vector.multi_reduction <add>, %208, %cst_70 [1] : vector<32x128xf32> to vector<32xf32>
      %210 = vector.shape_cast %209 : vector<32xf32> to vector<32x1xf32>
      %cst_71 = arith.constant 1.280000e+02 : f32
      %211 = vector.broadcast %cst_71 : f32 to vector<32x1xf32>
      %212 = arith.divf %210, %211 : vector<32x1xf32>
      %cst_72 = arith.constant 9.99999996E-13 : f32
      %213 = vector.broadcast %cst_72 : f32 to vector<32x1xf32>
      %214 = arith.addf %212, %213 : vector<32x1xf32>
      %215 = math.rsqrt %214 : vector<32x1xf32>
      %216 = vector.broadcast %215 : vector<32x1xf32> to vector<32x128xf32>
      %217 = arith.mulf %207, %216 : vector<32x128xf32>
      %218 = vector.broadcast %200 : vector<1x128xf32> to vector<32x128xf32>
      %219 = arith.mulf %217, %218 : vector<32x128xf32>
      %220 = vector.broadcast %201 : vector<1x128xf32> to vector<32x128xf32>
      %221 = arith.addf %219, %220 : vector<32x128xf32>
      %c0_73 = arith.constant 0 : index
      %c0_74 = arith.constant 0 : index
      %222 = vector.load %arg14[%c0_73, %c0_74] : memref<32x128xf32, #tpu.memory_space<vmem>>, vector<32x128xf32>
      tpu.vector_store %arg14[%c0_73, %c0_74], %221 {strides = array<i32>} : memref<32x128xf32, #tpu.memory_space<vmem>>, vector<32x128xf32>,
    } else {
    }
    %c0 = arith.constant 0 : index
    %c0_1 = arith.constant 0 : index
    %3 = vector.load %arg14[%c0, %c0_1] : memref<32x128xf32, #tpu.memory_space<vmem>>, vector<32x128xf32>
    %c0_2 = arith.constant 0 : index
    %c0_3 = arith.constant 0 : index
    %4 = vector.load %arg2[%c0_2, %c0_3] : memref<32x32xf32, #tpu.memory_space<vmem>>, vector<32x32xf32>
    %c0_4 = arith.constant 0 : index
    %c0_5 = arith.constant 0 : index
    %c0_6 = arith.constant 0 : index
    %5 = vector.load %arg9[%c0_4, %c0_5, %c0_6] : memref<1x8x384xf32, #tpu.memory_space<vmem>>, vector<1x8x384xf32>
    %6 = vector.shape_cast %5 : vector<1x8x384xf32> to vector<8x384xf32>
    %7 = vector.extract_strided_slice %6 {offsets = [0, 0], sizes = [1, 384], strides = [1, 1]} : vector<8x384xf32> to vector<1x384xf32>
    %8 = vector.extract_strided_slice %6 {offsets = [1, 0], sizes = [1, 128], strides = [1, 1]} : vector<8x384xf32> to vector<1x128xf32>
    %9 = vector.extract_strided_slice %6 {offsets = [2, 0], sizes = [1, 128], strides = [1, 1]} : vector<8x384xf32> to vector<1x128xf32>
    %10 = vector.extract_strided_slice %6 {offsets = [3, 0], sizes = [1, 128], strides = [1, 1]} : vector<8x384xf32> to vector<1x128xf32>
    %11 = vector.extract_strided_slice %6 {offsets = [4, 0], sizes = [1, 256], strides = [1, 1]} : vector<8x384xf32> to vector<1x256xf32>
    %12 = vector.extract_strided_slice %6 {offsets = [5, 0], sizes = [1, 128], strides = [1, 1]} : vector<8x384xf32> to vector<1x128xf32>
    %13 = vector.extract_strided_slice %6 {offsets = [6, 0], sizes = [1, 128], strides = [1, 1]} : vector<8x384xf32> to vector<1x128xf32>
    %14 = vector.extract_strided_slice %6 {offsets = [7, 0], sizes = [1, 128], strides = [1, 1]} : vector<8x384xf32> to vector<1x128xf32>
    %15 = arith.truncf %3 : vector<32x128xf32> to vector<32x128xbf16>
    %c0_7 = arith.constant 0 : index
    %c0_8 = arith.constant 0 : index
    %c0_9 = arith.constant 0 : index
    %16 = vector.load %arg5[%c0_7, %c0_8, %c0_9] : memref<1x128x384xbf16, #tpu.memory_space<vmem>>, vector<1x128x384xbf16>
    %17 = vector.shape_cast %16 : vector<1x128x384xbf16> to vector<128x384xbf16>
    %cst = arith.constant dense<0.000000e+00> : vector<32x384xf32>
    %18 = tpu.matmul %15, %17, %cst {dimension_numbers = #tpu.dot_dimension_numbers<[1], [0], [0], [1], [0, 0, 1, 1], [], []>} : vector<32x128xbf16>, vector<128x384xbf16>, vector<32x384xf32> -> vector<32x384xf32>
    %19 = vector.broadcast %7 : vector<1x384xf32> to vector<32x384xf32>
    %20 = arith.addf %18, %19 : vector<32x384xf32>
    %c0_10 = arith.constant 0 : index
    %c0_11 = arith.constant 0 : index
    %c0_12 = arith.constant 0 : index
    %21 = vector.load %arg6[%c0_10, %c0_11, %c0_12] : memref<1x128x128xbf16, #tpu.memory_space<vmem>>, vector<1x128x128xbf16>
    %22 = vector.shape_cast %21 : vector<1x128x128xbf16> to vector<128x128xbf16>
    %23 = vector.extract_strided_slice %20 {offsets = [0, 0], sizes = [32, 32], strides = [1, 1]} : vector<32x384xf32> to vector<32x32xf32>
    %24 = arith.truncf %23 : vector<32x32xf32> to vector<32x32xbf16>
    %25 = vector.extract_strided_slice %20 {offsets = [0, 128], sizes = [32, 32], strides = [1, 1]} : vector<32x384xf32> to vector<32x32xf32>
    %26 = arith.truncf %25 : vector<32x32xf32> to vector<32x32xbf16>
    %27 = vector.extract_strided_slice %20 {offsets = [0, 256], sizes = [32, 32], strides = [1, 1]} : vector<32x384xf32> to vector<32x32xf32>
    %28 = arith.truncf %27 : vector<32x32xf32> to vector<32x32xbf16>
    %cst_13 = arith.constant dense<0.000000e+00> : vector<32x32xf32>
    %29 = tpu.matmul %24, %26, %cst_13 {dimension_numbers = #tpu.dot_dimension_numbers<[1], [1], [0], [0], [0, 0, 1, 0], [], []>} : vector<32x32xbf16>, vector<32x32xbf16>, vector<32x32xf32> -> vector<32x32xf32>
    %cst_14 = arith.constant 0.176776692 : f32
    %30 = vector.broadcast %cst_14 : f32 to vector<32x32xf32>
    %31 = arith.mulf %29, %30 : vector<32x32xf32>
    %32 = arith.addf %31, %4 : vector<32x32xf32>
    %cst_15 = arith.constant dense<0xFF800000> : vector<32xf32>
    %33 = vector.multi_reduction <maximumf>, %32, %cst_15 [1] : vector<32x32xf32> to vector<32xf32>
    %34 = vector.shape_cast %33 : vector<32xf32> to vector<32x1xf32>
    %35 = vector.broadcast %34 : vector<32x1xf32> to vector<32x32xf32>
    %36 = arith.subf %32, %35 : vector<32x32xf32>
    %37 = math.exp %36 : vector<32x32xf32>
    %cst_16 = arith.constant dense<0.000000e+00> : vector<32xf32>
    %38 = vector.multi_reduction <add>, %37, %cst_16 [1] : vector<32x32xf32> to vector<32xf32>
    %39 = vector.shape_cast %38 : vector<32xf32> to vector<32x1xf32>
    %40 = tpu.reciprocal %39 {approx = true} : vector<32x1xf32> -> vector<32x1xf32>
    %41 = vector.broadcast %40 : vector<32x1xf32> to vector<32x32xf32>
    %42 = arith.mulf %37, %41 : vector<32x32xf32>
    %43 = arith.truncf %42 : vector<32x32xf32> to vector<32x32xbf16>
    %cst_17 = arith.constant dense<0.000000e+00> : vector<32x32xf32>
    %44 = tpu.matmul %43, %28, %cst_17 {dimension_numbers = #tpu.dot_dimension_numbers<[1], [0], [0], [1], [0, 0, 1, 1], [], []>} : vector<32x32xbf16>, vector<32x32xbf16>, vector<32x32xf32> -> vector<32x32xf32>
    %45 = arith.truncf %44 : vector<32x32xf32> to vector<32x32xbf16>
    %46 = vector.extract_strided_slice %22 {offsets = [0, 0], sizes = [32, 128], strides = [1, 1]} : vector<128x128xbf16> to vector<32x128xbf16>
    %cst_18 = arith.constant dense<0.000000e+00> : vector<32x128xf32>
    %47 = tpu.matmul %45, %46, %cst_18 {dimension_numbers = #tpu.dot_dimension_numbers<[1], [0], [0], [1], [0, 0, 1, 1], [], []>} : vector<32x32xbf16>, vector<32x128xbf16>, vector<32x128xf32> -> vector<32x128xf32>
    %48 = vector.extract_strided_slice %20 {offsets = [0, 32], sizes = [32, 32], strides = [1, 1]} : vector<32x384xf32> to vector<32x32xf32>
    %49 = arith.truncf %48 : vector<32x32xf32> to vector<32x32xbf16>
    %50 = vector.extract_strided_slice %20 {offsets = [0, 160], sizes = [32, 32], strides = [1, 1]} : vector<32x384xf32> to vector<32x32xf32>
    %51 = arith.truncf %50 : vector<32x32xf32> to vector<32x32xbf16>
    %52 = vector.extract_strided_slice %20 {offsets = [0, 288], sizes = [32, 32], strides = [1, 1]} : vector<32x384xf32> to vector<32x32xf32>
    %53 = arith.truncf %52 : vector<32x32xf32> to vector<32x32xbf16>
    %cst_19 = arith.constant dense<0.000000e+00> : vector<32x32xf32>
    %54 = tpu.matmul %49, %51, %cst_19 {dimension_numbers = #tpu.dot_dimension_numbers<[1], [1], [0], [0], [0, 0, 1, 0], [], []>} : vector<32x32xbf16>, vector<32x32xbf16>, vector<32x32xf32> -> vector<32x32xf32>
    %cst_20 = arith.constant 0.176776692 : f32
    %55 = vector.broadcast %cst_20 : f32 to vector<32x32xf32>
    %56 = arith.mulf %54, %55 : vector<32x32xf32>
    %57 = arith.addf %56, %4 : vector<32x32xf32>
    %cst_21 = arith.constant dense<0xFF800000> : vector<32xf32>
    %58 = vector.multi_reduction <maximumf>, %57, %cst_21 [1] : vector<32x32xf32> to vector<32xf32>
    %59 = vector.shape_cast %58 : vector<32xf32> to vector<32x1xf32>
    %60 = vector.broadcast %59 : vector<32x1xf32> to vector<32x32xf32>
    %61 = arith.subf %57, %60 : vector<32x32xf32>
    %62 = math.exp %61 : vector<32x32xf32>
    %cst_22 = arith.constant dense<0.000000e+00> : vector<32xf32>
    %63 = vector.multi_reduction <add>, %62, %cst_22 [1] : vector<32x32xf32> to vector<32xf32>
    %64 = vector.shape_cast %63 : vector<32xf32> to vector<32x1xf32>
    %65 = tpu.reciprocal %64 {approx = true} : vector<32x1xf32> -> vector<32x1xf32>
    %66 = vector.broadcast %65 : vector<32x1xf32> to vector<32x32xf32>
    %67 = arith.mulf %62, %66 : vector<32x32xf32>
    %68 = arith.truncf %67 : vector<32x32xf32> to vector<32x32xbf16>
    %cst_23 = arith.constant dense<0.000000e+00> : vector<32x32xf32>
    %69 = tpu.matmul %68, %53, %cst_23 {dimension_numbers = #tpu.dot_dimension_numbers<[1], [0], [0], [1], [0, 0, 1, 1], [], []>} : vector<32x32xbf16>, vector<32x32xbf16>, vector<32x32xf32> -> vector<32x32xf32>
    %70 = arith.truncf %69 : vector<32x32xf32> to vector<32x32xbf16>
    %71 = vector.extract_strided_slice %22 {offsets = [32, 0], sizes = [32, 128], strides = [1, 1]} : vector<128x128xbf16> to vector<32x128xbf16>
    %cst_24 = arith.constant dense<0.000000e+00> : vector<32x128xf32>
    %72 = tpu.matmul %70, %71, %cst_24 {dimension_numbers = #tpu.dot_dimension_numbers<[1], [0], [0], [1], [0, 0, 1, 1], [], []>} : vector<32x32xbf16>, vector<32x128xbf16>, vector<32x128xf32> -> vector<32x128xf32>
    %73 = arith.addf %47, %72 : vector<32x128xf32>
    %74 = vector.extract_strided_slice %20 {offsets = [0, 64], sizes = [32, 32], strides = [1, 1]} : vector<32x384xf32> to vector<32x32xf32>
    %75 = arith.truncf %74 : vector<32x32xf32> to vector<32x32xbf16>
    %76 = vector.extract_strided_slice %20 {offsets = [0, 192], sizes = [32, 32], strides = [1, 1]} : vector<32x384xf32> to vector<32x32xf32>
    %77 = arith.truncf %76 : vector<32x32xf32> to vector<32x32xbf16>
    %78 = vector.extract_strided_slice %20 {offsets = [0, 320], sizes = [32, 32], strides = [1, 1]} : vector<32x384xf32> to vector<32x32xf32>
    %79 = arith.truncf %78 : vector<32x32xf32> to vector<32x32xbf16>
    %cst_25 = arith.constant dense<0.000000e+00> : vector<32x32xf32>
    %80 = tpu.matmul %75, %77, %cst_25 {dimension_numbers = #tpu.dot_dimension_numbers<[1], [1], [0], [0], [0, 0, 1, 0], [], []>} : vector<32x32xbf16>, vector<32x32xbf16>, vector<32x32xf32> -> vector<32x32xf32>
    %cst_26 = arith.constant 0.176776692 : f32
    %81 = vector.broadcast %cst_26 : f32 to vector<32x32xf32>
    %82 = arith.mulf %80, %81 : vector<32x32xf32>
    %83 = arith.addf %82, %4 : vector<32x32xf32>
    %cst_27 = arith.constant dense<0xFF800000> : vector<32xf32>
    %84 = vector.multi_reduction <maximumf>, %83, %cst_27 [1] : vector<32x32xf32> to vector<32xf32>
    %85 = vector.shape_cast %84 : vector<32xf32> to vector<32x1xf32>
    %86 = vector.broadcast %85 : vector<32x1xf32> to vector<32x32xf32>
    %87 = arith.subf %83, %86 : vector<32x32xf32>
    %88 = math.exp %87 : vector<32x32xf32>
    %cst_28 = arith.constant dense<0.000000e+00> : vector<32xf32>
    %89 = vector.multi_reduction <add>, %88, %cst_28 [1] : vector<32x32xf32> to vector<32xf32>
    %90 = vector.shape_cast %89 : vector<32xf32> to vector<32x1xf32>
    %91 = tpu.reciprocal %90 {approx = true} : vector<32x1xf32> -> vector<32x1xf32>
    %92 = vector.broadcast %91 : vector<32x1xf32> to vector<32x32xf32>
    %93 = arith.mulf %88, %92 : vector<32x32xf32>
    %94 = arith.truncf %93 : vector<32x32xf32> to vector<32x32xbf16>
    %cst_29 = arith.constant dense<0.000000e+00> : vector<32x32xf32>
    %95 = tpu.matmul %94, %79, %cst_29 {dimension_numbers = #tpu.dot_dimension_numbers<[1], [0], [0], [1], [0, 0, 1, 1], [], []>} : vector<32x32xbf16>, vector<32x32xbf16>, vector<32x32xf32> -> vector<32x32xf32>
    %96 = arith.truncf %95 : vector<32x32xf32> to vector<32x32xbf16>
    %97 = vector.extract_strided_slice %22 {offsets = [64, 0], sizes = [32, 128], strides = [1, 1]} : vector<128x128xbf16> to vector<32x128xbf16>
    %cst_30 = arith.constant dense<0.000000e+00> : vector<32x128xf32>
    %98 = tpu.matmul %96, %97, %cst_30 {dimension_numbers = #tpu.dot_dimension_numbers<[1], [0], [0], [1], [0, 0, 1, 1], [], []>} : vector<32x32xbf16>, vector<32x128xbf16>, vector<32x128xf32> -> vector<32x128xf32>
    %99 = arith.addf %73, %98 : vector<32x128xf32>
    %100 = vector.extract_strided_slice %20 {offsets = [0, 96], sizes = [32, 32], strides = [1, 1]} : vector<32x384xf32> to vector<32x32xf32>
    %101 = arith.truncf %100 : vector<32x32xf32> to vector<32x32xbf16>
    %102 = vector.extract_strided_slice %20 {offsets = [0, 224], sizes = [32, 32], strides = [1, 1]} : vector<32x384xf32> to vector<32x32xf32>
    %103 = arith.truncf %102 : vector<32x32xf32> to vector<32x32xbf16>
    %104 = vector.extract_strided_slice %20 {offsets = [0, 352], sizes = [32, 32], strides = [1, 1]} : vector<32x384xf32> to vector<32x32xf32>
    %105 = arith.truncf %104 : vector<32x32xf32> to vector<32x32xbf16>
    %cst_31 = arith.constant dense<0.000000e+00> : vector<32x32xf32>
    %106 = tpu.matmul %101, %103, %cst_31 {dimension_numbers = #tpu.dot_dimension_numbers<[1], [1], [0], [0], [0, 0, 1, 0], [], []>} : vector<32x32xbf16>, vector<32x32xbf16>, vector<32x32xf32> -> vector<32x32xf32>
    %cst_32 = arith.constant 0.176776692 : f32
    %107 = vector.broadcast %cst_32 : f32 to vector<32x32xf32>
    %108 = arith.mulf %106, %107 : vector<32x32xf32>
    %109 = arith.addf %108, %4 : vector<32x32xf32>
    %cst_33 = arith.constant dense<0xFF800000> : vector<32xf32>
    %110 = vector.multi_reduction <maximumf>, %109, %cst_33 [1] : vector<32x32xf32> to vector<32xf32>
    %111 = vector.shape_cast %110 : vector<32xf32> to vector<32x1xf32>
    %112 = vector.broadcast %111 : vector<32x1xf32> to vector<32x32xf32>
    %113 = arith.subf %109, %112 : vector<32x32xf32>
    %114 = math.exp %113 : vector<32x32xf32>
    %cst_34 = arith.constant dense<0.000000e+00> : vector<32xf32>
    %115 = vector.multi_reduction <add>, %114, %cst_34 [1] : vector<32x32xf32> to vector<32xf32>
    %116 = vector.shape_cast %115 : vector<32xf32> to vector<32x1xf32>
    %117 = tpu.reciprocal %116 {approx = true} : vector<32x1xf32> -> vector<32x1xf32>
    %118 = vector.broadcast %117 : vector<32x1xf32> to vector<32x32xf32>
    %119 = arith.mulf %114, %118 : vector<32x32xf32>
    %120 = arith.truncf %119 : vector<32x32xf32> to vector<32x32xbf16>
    %cst_35 = arith.constant dense<0.000000e+00> : vector<32x32xf32>
    %121 = tpu.matmul %120, %105, %cst_35 {dimension_numbers = #tpu.dot_dimension_numbers<[1], [0], [0], [1], [0, 0, 1, 1], [], []>} : vector<32x32xbf16>, vector<32x32xbf16>, vector<32x32xf32> -> vector<32x32xf32>
    %122 = arith.truncf %121 : vector<32x32xf32> to vector<32x32xbf16>
    %123 = vector.extract_strided_slice %22 {offsets = [96, 0], sizes = [32, 128], strides = [1, 1]} : vector<128x128xbf16> to vector<32x128xbf16>
    %cst_36 = arith.constant dense<0.000000e+00> : vector<32x128xf32>
    %124 = tpu.matmul %122, %123, %cst_36 {dimension_numbers = #tpu.dot_dimension_numbers<[1], [0], [0], [1], [0, 0, 1, 1], [], []>} : vector<32x32xbf16>, vector<32x128xbf16>, vector<32x128xf32> -> vector<32x128xf32>
    %125 = arith.addf %99, %124 : vector<32x128xf32>
    %126 = vector.broadcast %8 : vector<1x128xf32> to vector<32x128xf32>
    %127 = arith.addf %125, %126 : vector<32x128xf32>
    %128 = arith.addf %127, %3 : vector<32x128xf32>
    %cst_37 = arith.constant dense<0.000000e+00> : vector<32xf32>
    %129 = vector.multi_reduction <add>, %128, %cst_37 [1] : vector<32x128xf32> to vector<32xf32>
    %130 = vector.shape_cast %129 : vector<32xf32> to vector<32x1xf32>
    %cst_38 = arith.constant 1.280000e+02 : f32
    %131 = vector.broadcast %cst_38 : f32 to vector<32x1xf32>
    %132 = arith.divf %130, %131 : vector<32x1xf32>
    %133 = vector.broadcast %132 : vector<32x1xf32> to vector<32x128xf32>
    %134 = arith.subf %128, %133 : vector<32x128xf32>
    %135 = arith.mulf %134, %134 : vector<32x128xf32>
    %cst_39 = arith.constant dense<0.000000e+00> : vector<32xf32>
    %136 = vector.multi_reduction <add>, %135, %cst_39 [1] : vector<32x128xf32> to vector<32xf32>
    %137 = vector.shape_cast %136 : vector<32xf32> to vector<32x1xf32>
    %cst_40 = arith.constant 1.280000e+02 : f32
    %138 = vector.broadcast %cst_40 : f32 to vector<32x1xf32>
    %139 = arith.divf %137, %138 : vector<32x1xf32>
    %cst_41 = arith.constant 9.99999996E-13 : f32
    %140 = vector.broadcast %cst_41 : f32 to vector<32x1xf32>
    %141 = arith.addf %139, %140 : vector<32x1xf32>
    %142 = math.rsqrt %141 : vector<32x1xf32>
    %143 = vector.broadcast %142 : vector<32x1xf32> to vector<32x128xf32>
    %144 = arith.mulf %134, %143 : vector<32x128xf32>
    %145 = vector.broadcast %9 : vector<1x128xf32> to vector<32x128xf32>
    %146 = arith.mulf %144, %145 : vector<32x128xf32>
    %147 = vector.broadcast %10 : vector<1x128xf32> to vector<32x128xf32>
    %148 = arith.addf %146, %147 : vector<32x128xf32>
    %149 = arith.truncf %148 : vector<32x128xf32> to vector<32x128xbf16>
    %c0_42 = arith.constant 0 : index
    %c0_43 = arith.constant 0 : index
    %c0_44 = arith.constant 0 : index
    %150 = vector.load %arg7[%c0_42, %c0_43, %c0_44] : memref<1x128x256xbf16, #tpu.memory_space<vmem>>, vector<1x128x256xbf16>
    %151 = vector.shape_cast %150 : vector<1x128x256xbf16> to vector<128x256xbf16>
    %cst_45 = arith.constant dense<0.000000e+00> : vector<32x256xf32>
    %152 = tpu.matmul %149, %151, %cst_45 {dimension_numbers = #tpu.dot_dimension_numbers<[1], [0], [0], [1], [0, 0, 1, 1], [], []>} : vector<32x128xbf16>, vector<128x256xbf16>, vector<32x256xf32> -> vector<32x256xf32>
    %153 = vector.broadcast %11 : vector<1x256xf32> to vector<32x256xf32>
    %154 = arith.addf %152, %153 : vector<32x256xf32>
    %155 = arith.mulf %154, %154 : vector<32x256xf32>
    %156 = arith.mulf %154, %155 : vector<32x256xf32>
    %cst_46 = arith.constant 4.471500e-02 : f32
    %157 = vector.broadcast %cst_46 : f32 to vector<32x256xf32>
    %158 = arith.mulf %157, %156 : vector<32x256xf32>
    %159 = arith.addf %154, %158 : vector<32x256xf32>
    %cst_47 = arith.constant 0.797884583 : f32
    %160 = vector.broadcast %cst_47 : f32 to vector<32x256xf32>
    %161 = arith.mulf %160, %159 : vector<32x256xf32>
    %162 = math.tanh %161 : vector<32x256xf32>
    %cst_48 = arith.constant 1.000000e+00 : f32
    %163 = vector.broadcast %cst_48 : f32 to vector<32x256xf32>
    %164 = arith.addf %163, %162 : vector<32x256xf32>
    %cst_49 = arith.constant 5.000000e-01 : f32
    %165 = vector.broadcast %cst_49 : f32 to vector<32x256xf32>
    %166 = arith.mulf %165, %164 : vector<32x256xf32>
    %167 = arith.mulf %154, %166 : vector<32x256xf32>
    %168 = arith.truncf %167 : vector<32x256xf32> to vector<32x256xbf16>
    %c0_50 = arith.constant 0 : index
    %c0_51 = arith.constant 0 : index
    %c0_52 = arith.constant 0 : index
    %169 = vector.load %arg8[%c0_50, %c0_51, %c0_52] : memref<1x256x128xbf16, #tpu.memory_space<vmem>>, vector<1x256x128xbf16>
    %170 = vector.shape_cast %169 : vector<1x256x128xbf16> to vector<256x128xbf16>
    %cst_53 = arith.constant dense<0.000000e+00> : vector<32x128xf32>
    %171 = tpu.matmul %168, %170, %cst_53 {dimension_numbers = #tpu.dot_dimension_numbers<[1], [0], [0], [1], [0, 0, 1, 1], [], []>} : vector<32x256xbf16>, vector<256x128xbf16>, vector<32x128xf32> -> vector<32x128xf32>
    %172 = vector.broadcast %12 : vector<1x128xf32> to vector<32x128xf32>
    %173 = arith.addf %171, %172 : vector<32x128xf32>
    %174 = arith.addf %173, %148 : vector<32x128xf32>
    %cst_54 = arith.constant dense<0.000000e+00> : vector<32xf32>
    %175 = vector.multi_reduction <add>, %174, %cst_54 [1] : vector<32x128xf32> to vector<32xf32>
    %176 = vector.shape_cast %175 : vector<32xf32> to vector<32x1xf32>
    %cst_55 = arith.constant 1.280000e+02 : f32
    %177 = vector.broadcast %cst_55 : f32 to vector<32x1xf32>
    %178 = arith.divf %176, %177 : vector<32x1xf32>
    %179 = vector.broadcast %178 : vector<32x1xf32> to vector<32x128xf32>
    %180 = arith.subf %174, %179 : vector<32x128xf32>
    %181 = arith.mulf %180, %180 : vector<32x128xf32>
    %cst_56 = arith.constant dense<0.000000e+00> : vector<32xf32>
    %182 = vector.multi_reduction <add>, %181, %cst_56 [1] : vector<32x128xf32> to vector<32xf32>
    %183 = vector.shape_cast %182 : vector<32xf32> to vector<32x1xf32>
    %cst_57 = arith.constant 1.280000e+02 : f32
    %184 = vector.broadcast %cst_57 : f32 to vector<32x1xf32>
    %185 = arith.divf %183, %184 : vector<32x1xf32>
    %cst_58 = arith.constant 9.99999996E-13 : f32
    %186 = vector.broadcast %cst_58 : f32 to vector<32x1xf32>
    %187 = arith.addf %185, %186 : vector<32x1xf32>
    %188 = math.rsqrt %187 : vector<32x1xf32>
    %189 = vector.broadcast %188 : vector<32x1xf32> to vector<32x128xf32>
    %190 = arith.mulf %180, %189 : vector<32x128xf32>
    %191 = vector.broadcast %13 : vector<1x128xf32> to vector<32x128xf32>
    %192 = arith.mulf %190, %191 : vector<32x128xf32>
    %193 = vector.broadcast %14 : vector<1x128xf32> to vector<32x128xf32>
    %194 = arith.addf %192, %193 : vector<32x128xf32>
    %c0_59 = arith.constant 0 : index
    %c0_60 = arith.constant 0 : index
    %195 = vector.load %arg14[%c0_59, %c0_60] : memref<32x128xf32, #tpu.memory_space<vmem>>, vector<32x128xf32>
    tpu.vector_store %arg14[%c0_59, %c0_60], %194 {strides = array<i32>} : memref<32x128xf32, #tpu.memory_space<vmem>>, vector<32x128xf32>,
    %c1_i32 = arith.constant 1 : i32
    %196 = arith.cmpi eq, %arg0, %c1_i32 : i32
    %197 = arith.extui %196 : i1 to i32
    %c0_i32_61 = arith.constant 0 : i32
    %198 = arith.cmpi ne, %197, %c0_i32_61 : i32
    scf.if %198 {
      %199 = arith.truncf %194 : vector<32x128xf32> to vector<32x128xbf16>
      %c0_62 = arith.constant 0 : index
      %c0_63 = arith.constant 0 : index
      %200 = vector.load %arg10[%c0_62, %c0_63] : memref<128x64xbf16, #tpu.memory_space<vmem>>, vector<128x64xbf16>
      %cst_64 = arith.constant dense<0.000000e+00> : vector<32x64xf32>
      %201 = tpu.matmul %199, %200, %cst_64 {dimension_numbers = #tpu.dot_dimension_numbers<[1], [0], [0], [1], [0, 0, 1, 1], [], []>} : vector<32x128xbf16>, vector<128x64xbf16>, vector<32x64xf32> -> vector<32x64xf32>
      %c0_65 = arith.constant 0 : index
      %c0_66 = arith.constant 0 : index
      %202 = vector.load %arg11[%c0_65, %c0_66] : memref<1x64xf32, #tpu.memory_space<vmem>>, vector<1x64xf32>
      %203 = vector.broadcast %202 : vector<1x64xf32> to vector<32x64xf32>
      %204 = arith.addf %201, %203 : vector<32x64xf32>
      %cst_67 = arith.constant 0.000000e+00 : f32
      %205 = vector.broadcast %cst_67 : f32 to vector<32x64xf32>
      %206 = arith.cmpf ogt, %204, %205 : vector<32x64xf32>
      %cst_68 = arith.constant 0.000000e+00 : f32
      %207 = vector.broadcast %cst_68 : f32 to vector<32x64xf32>
      %208 = arith.minimumf %204, %207 : vector<32x64xf32>
      %209 = math.exp %208 : vector<32x64xf32>
      %cst_69 = arith.constant 1.000000e+00 : f32
      %210 = vector.broadcast %cst_69 : f32 to vector<32x64xf32>
      %211 = arith.subf %209, %210 : vector<32x64xf32>
      %cst_70 = arith.constant 1.67326319 : f32
      %212 = vector.broadcast %cst_70 : f32 to vector<32x64xf32>
      %213 = arith.mulf %212, %211 : vector<32x64xf32>
      %214 = arith.select %206, %204, %213 : vector<32x64xi1>, vector<32x64xf32>
      %cst_71 = arith.constant 1.05070102 : f32
      %215 = vector.broadcast %cst_71 : f32 to vector<32x64xf32>
      %216 = arith.mulf %215, %214 : vector<32x64xf32>
      %217 = arith.truncf %216 : vector<32x64xf32> to vector<32x64xbf16>
      %c0_72 = arith.constant 0 : index
      %c0_73 = arith.constant 0 : index
      %218 = vector.load %arg12[%c0_72, %c0_73] : memref<64x128xbf16, #tpu.memory_space<vmem>>, vector<64x128xbf16>
      %cst_74 = arith.constant dense<0.000000e+00> : vector<32x128xf32>
      %219 = tpu.matmul %217, %218, %cst_74 {dimension_numbers = #tpu.dot_dimension_numbers<[1], [0], [0], [1], [0, 0, 1, 1], [], []>} : vector<32x64xbf16>, vector<64x128xbf16>, vector<32x128xf32> -> vector<32x128xf32>
      %c0_75 = arith.constant 0 : index
      %c0_76 = arith.constant 0 : index
      %220 = vector.load %arg13[%c0_75, %c0_76] : memref<32x128xf32, #tpu.memory_space<vmem>>, vector<32x128xf32>
      tpu.vector_store %arg13[%c0_75, %c0_76], %219 {strides = array<i32>} : memref<32x128xf32, #tpu.memory_space<vmem>>, vector<32x128xf32>,
    } else {
    }
    return
  }
  func.func @transform_0(%arg0: i32) -> (i32, i32) {
    %c0_i32 = arith.constant 0 : i32
    %c0_i32_0 = arith.constant 0 : i32
    %c0_i32_1 = arith.constant 0 : i32
    return %c0_i32, %c0_i32_0 : i32, i32
  }
  func.func @transform_1(%arg0: i32) -> (i32, i32) {
    %c0_i32 = arith.constant 0 : i32
    %c0_i32_0 = arith.constant 0 : i32
    %c0_i32_1 = arith.constant 0 : i32
    return %c0_i32, %c0_i32_0 : i32, i32
  }
  func.func @transform_2(%arg0: i32) -> (i32, i32) {
    %c0_i32 = arith.constant 0 : i32
    %c0_i32_0 = arith.constant 0 : i32
    %c0_i32_1 = arith.constant 0 : i32
    return %c0_i32, %c0_i32_0 : i32, i32
  }
  func.func @transform_3(%arg0: i32) -> (i32, i32) {
    %c0_i32 = arith.constant 0 : i32
    %c0_i32_0 = arith.constant 0 : i32
    %c0_i32_1 = arith.constant 0 : i32
    return %c0_i32, %c0_i32_0 : i32, i32
  }
  func.func @transform_4(%arg0: i32) -> (i32, i32, i32) {
    %c0_i32 = arith.constant 0 : i32
    %c0_i32_0 = arith.constant 0 : i32
    %c0_i32_1 = arith.constant 0 : i32
    return %arg0, %c0_i32, %c0_i32_0 : i32, i32, i32
  }
  func.func @transform_5(%arg0: i32) -> (i32, i32, i32) {
    %c0_i32 = arith.constant 0 : i32
    %c0_i32_0 = arith.constant 0 : i32
    %c0_i32_1 = arith.constant 0 : i32
    return %arg0, %c0_i32, %c0_i32_0 : i32, i32, i32
  }
  func.func @transform_6(%arg0: i32) -> (i32, i32, i32) {
    %c0_i32 = arith.constant 0 : i32
    %c0_i32_0 = arith.constant 0 : i32
    %c0_i32_1 = arith.constant 0 : i32
    return %arg0, %c0_i32, %c0_i32_0 : i32, i32, i32
  }
  func.func @transform_7(%arg0: i32) -> (i32, i32, i32) {
    %c0_i32 = arith.constant 0 : i32
    %c0_i32_0 = arith.constant 0 : i32
    %c0_i32_1 = arith.constant 0 : i32
    return %arg0, %c0_i32, %c0_i32_0 : i32, i32, i32
  }
  func.func @transform_8(%arg0: i32) -> (i32, i32, i32) {
    %c0_i32 = arith.constant 0 : i32
    %c0_i32_0 = arith.constant 0 : i32
    %c0_i32_1 = arith.constant 0 : i32
    return %arg0, %c0_i32, %c0_i32_0 : i32, i32, i32
  }
  func.func @transform_9(%arg0: i32) -> (i32, i32) {
    %c0_i32 = arith.constant 0 : i32
    %c0_i32_0 = arith.constant 0 : i32
    %c0_i32_1 = arith.constant 0 : i32
    return %c0_i32, %c0_i32_0 : i32, i32
  }
  func.func @transform_10(%arg0: i32) -> (i32, i32) {
    %c0_i32 = arith.constant 0 : i32
    %c0_i32_0 = arith.constant 0 : i32
    %c0_i32_1 = arith.constant 0 : i32
    return %c0_i32, %c0_i32_0 : i32, i32
  }
  func.func @transform_11(%arg0: i32) -> (i32, i32) {
    %c0_i32 = arith.constant 0 : i32
    %c0_i32_0 = arith.constant 0 : i32
    %c0_i32_1 = arith.constant 0 : i32
    return %c0_i32, %c0_i32_0 : i32, i32
  }
  func.func @transform_12(%arg0: i32) -> (i32, i32) {
    %c0_i32 = arith.constant 0 : i32
    %c0_i32_0 = arith.constant 0 : i32
    %c0_i32_1 = arith.constant 0 : i32
    return %c0_i32, %c0_i32_0 : i32, i32
  }
}

</mosaic_0001>

<bundles_post_ra>
// kernel: tpu_custom_call.1
= control target key start
LH: loop header
LB: loop body
LE: loop exit
PB: predicated region body
PF: predicated region fallthrough
CT: control target
= control target key end

     0   :  { %s4742_s0 = inlined_call_operand.vmem [shape: f32[32,128], index: 0, kind: input, shape index: {}]   ;;  %s4743_s1 = inlined_call_operand.hbm [shape: f32[32,32], index: 1, kind: input, shape index: {}]   ;;  %s4744_s2 = inlined_call_operand.hbm [shape: f32[1,128], index: 2, kind: input, shape index: {}]   ;;  %s4745_s3 = inlined_call_operand.hbm [shape: f32[1,128], index: 3, kind: input, shape index: {}]   ;;  %s4746_s4 = inlined_call_operand.hbm [shape: bf16[2,128,384], index: 4, kind: input, shape index: {}]   ;;  %s4747_s5 = inlined_call_operand.hbm [shape: bf16[2,128,128], index: 5, kind: input, shape index: {}]   ;;  %s4748_s6 = inlined_call_operand.hbm [shape: bf16[2,128,256], index: 6, kind: input, shape index: {}]   ;;  %s4749_s7 = inlined_call_operand.hbm [shape: bf16[2,256,128], index: 7, kind: input, shape index: {}]   ;;  %s4750_s8 = inlined_call_operand.vmem [shape: f32[2,8,384], index: 8, kind: input, shape index: {}]   ;;  %s4751_s9 = inlined_call_operand.vmem [shape: bf16[128,64], index: 9, kind: input, shape index: {}]   ;;  %s4752_s10 = inlined_call_operand.vmem [shape: f32[1,64], index: 10, kind: input, shape index: {}]   ;;  %s4753_s11 = inlined_call_operand.vmem [shape: bf16[64,128], index: 11, kind: input, shape index: {}]   ;;  %s4754_s12 = inlined_call_operand.hbm [shape: f32[32,128], index: 12, kind: output, shape index: {}]  }
   0x1   :  { %4767 = sst [smem:[#allocation24_spill]] %s4742_s0 }
   0x2   :  { %4768 = sst [smem:[#allocation25_spill]] %s4744_s2 }
   0x3   :  { %4769 = sst [smem:[#allocation26_spill]] %s4746_s4 }
   0x4   :  { %4770 = sst [smem:[#allocation27_spill]] %s4748_s6 }
   0x5   :  { %4771 = sst [smem:[#allocation28_spill]] %s4750_s8 }
   0x6   :  { %4772 = sst [smem:[#allocation29_spill]] %s4751_s9 }
   0x7   :  { %4773 = sst [smem:[#allocation30_spill]] %s4752_s10 }
   0x8   :  { %4774 = sst [smem:[#allocation31_spill]] %s4753_s11 }
   0x9   :  { %4775 = sst [smem:[#allocation32_spill]] %s4754_s12 }
   0xa   :  { %17 = vsyncpa [#allocation4], 0 }
   0xb   :  { %18 = vsyncpa [#allocation7], 0 }
   0xc   :  { %19 = vsyncpa [#allocation10], 0 }
   0xd   :  { %21 = vsyncpa [#allocation10 + $0x1], 0 }
   0xe   :  { %22 = vsyncpa [#allocation13], 0 }
   0xf   :  { %24 = vsyncpa [#allocation13 + $0x1], 0 }
  0x10   :  { %25 = vsyncpa [#allocation5], 0  ;;  %s4039_s21 = smov 0   ;;  %s4041_s22 = smov 0  }
  0x11   :  { %s4043_s23 = smov 0   ;;  %s4045_s24 = smov 0  }
  0x12 LB: > { %4776 = sst [smem:[#allocation21_spill]] %s3948_s23  ;;  %s4058_s25 = sadd.s32 4294967295, %s3952_s24   ;;  %s3952_s24 = sphi %s4045_s24, %s4807_s24   ;;  %s3948_s23 = sphi %s4043_s23, %s4809_s23   ;;  %s3944_s22 = sphi %s4041_s22, %s4811_s22   ;;  %s3940_s21 = sphi %s4039_s21, %s4810_s21  }
  0x13   : > { %s4061_s26 = sadd.s32 1, %s3952_s24   ;;  %s122_s28 = sadd.s32 1, %s3948_s23 }
  0x14   : > { %4777 = sst [smem:[#allocation22_spill]] %s4061_s26  ;;  %s119_s27 = ssub.s32 %s3952_s24, %s4061_s26 }
  0x15   : > { %p120_p0 = scmp.eq.s32.totalorder %s119_s27, 0  ;;  %p129_p1 = scmp.ne.s32.totalorder %s3948_s23, %s3944_s22 }
  0x16   : > { %p130_p2 = scmp.eq.s32.totalorder %s3952_s24, 0  ;;  %p135_p3 = scmp.ne.s32.totalorder %s3944_s22, %s3940_s21 }
  0x17   : > { %s4071_s29 = scalar_select %p120_p0, %s3948_s23, %s122_s28  }
  0x18   : > { %p4073_p4 = por %p130_p2, %p129_p1  ;;  %p4758_p5 = scmp.eq.s32.totalorder %s4058_s25, 0 }
  0x19   : > { %4778 = sst [smem:[#allocation23_spill]] %s4071_s29  ;;  %p2971_p6 = scmp.ge.s32.totalorder %s3952_s24, 1 }
  0x1a   : > { %p334_p7 = scmp.lt.s32.totalorder %s3952_s24, 3  ;;  %p4082_p8 = por %p4758_p5, %p135_p3 }
  0x1b   : > { %s3954_s15 = smov [#allocation6]   ;;  %p3424_p12 = scmp.lt.s32.totalorder %s3952_s24, 2 }
  0x1c   : > { %s4780_s13 = scalar_select %p4082_p8, 1, 0 }
  0x1d   : > { %p4087_p10 = pnand %p2971_p6, %p334_p7  ;;  %s363_s16 = sshll.u32 %s3954_s15, 4  ;;  %s364_s16 = int_to_ptr.vmem [resolvable:$true] %s363_s16 }
  0x1e   : > { %s4102_s19 = sand.u32 1, %s3948_s23   ;;  %s3371_s20 = smul.u32 3072, %s3952_s24 }
  0x1f   : > { %s4781_s14 = scalar_select %p4087_p10, 1, 0 }
  0x20   : > { %p3398_p11 = pneg %p4087_p10  ;;  %s3370_s21 = smul.u32 192, %s4102_s19 }
  0x21   : > { %s3699_s27 = scalar_lea.vmem %s364_s16, 16  ;;  %s3706_s28 = scalar_lea.vmem %s364_s16, 32 }
  0x22   : > { %p4097_p13 = pnand %p3398_p11, %p4758_p5  ;;  %p3700_p1 = scmp.ne.s32.totalorder %s364_s16, %s3699_s27 }
  0x23   : > { %p3707_p6 = scmp.lt.s32.totalorder %s364_s16, %s364_s16  ;;  %p3708_p7 = scmp.lt.s32.totalorder %s3706_s28, %s3699_s27 }
  0x24   : > { %s4782_s18 = scalar_select %p4097_p13, 1, 0 }
  0x25   : > { %p4759_p0 = pneg %p4097_p13  ;;  %p3709_p11 = por %p3708_p7, %p3707_p6 }
  0x27   : > { %p3702_p2 = pnand %p3700_p1, %p4759_p0 }
  0x29   : > { %p3703_p3 = pneg %p3702_p2 }
  0x2b   : > { %p3710_p9 = pnand %p3709_p11, %p3703_p3 }
  0x2d   : > { %3713 = shalt.err (!%p3710_p9)
}
  0x2e   : > { %s4783_s2 = sld [smem:[#allocation25_spill]]  ;;  %s398_s27 = scalar_lea.vmem [#allocation9], %s3370_s21 }
  0x2f   : > { %s4784_s4 = sld [smem:[#allocation26_spill]]  ;;  %s405_s28 = sshll.u32 %s398_s27, 4  ;;  %s4129_s28 = int_to_ptr.vmem [resolvable:$true] %s405_s28 }
  0x30   : > { %p4125_p9 = pnand %p3424_p12, %p4073_p4 }
  0x32   : > { %p4139_p2 = pneg %p4125_p9 }
  0x34   : > { %3404 = dma.hbm_to_vmem [thread:$0]  (!%p4097_p13), %s4783_s2, 16, %s364_s16, [#allocation7]  }
  0x35   : > { %s4119_s26 = scalar_lea.hbm %s4784_s4, %s3371_s20  ;;  %s4786_s16 = sand.u32 1, %s3952_s24  }
  0x36   : > { %s4133_s17 = scalar_lea.sflag [#allocation10], %s4786_s16  ;;  %s3714_s23 = scalar_lea.hbm %s4119_s26, 3072 }
  0x37   : > { %p3715_p1 = scmp.ne.s32.totalorder %s4119_s26, %s3714_s23  ;;  %s3719_s21 = scalar_lea.hbm %s4784_s4, 6144 }
  0x38   : > { %p3720_p12 = scmp.lt.s32.totalorder %s4119_s26, %s4784_s4  ;;  %p3721_p6 = scmp.lt.s32.totalorder %s3719_s21, %s3714_s23 }
  0x39   : > { %p3717_p3 = pnand %p4139_p2, %p3715_p1 }
  0x3a   : > { %p3722_p7 = por %p3721_p6, %p3720_p12 }
  0x3b   : > { %p3718_p4 = pneg %p3717_p3 }
  0x3d   : > { %p3723_p11 = pnand %p3722_p7, %p3718_p4 }
  0x3f   : > { %3726 = shalt.err (!%p3723_p11)
}
  0x40   : > { %s3727_s16 = scalar_lea.vmem %s4129_s28, 3072  ;;  %s3955_s2 = smov [#allocation9]  }
  0x41   : > { %p3728_p5 = scmp.ne.s32.totalorder %s4129_s28, %s3727_s16  ;;  %s3732_s30 = sshll.u32 %s3955_s2, 4  ;;  %s3733_s30 = int_to_ptr.vmem [resolvable:$false] %s3732_s30 }
  0x42   : > { %s3734_s20 = scalar_lea.vmem %s3733_s30, 6144  ;;  %p3735_p0 = scmp.lt.s32.totalorder %s4129_s28, %s3733_s30 }
  0x43   : > { %p3730_p1 = pnand %p3728_p5, %p4139_p2  ;;  %p3736_p8 = scmp.lt.s32.totalorder %s3734_s20, %s3727_s16 }
  0x45   : > { %p3731_p3 = pneg %p3730_p1  ;;  %p3737_p10 = por %p3736_p8, %p3735_p0 }
  0x47   : > { %p3738_p13 = pnand %p3737_p10, %p3731_p3 }
  0x49   : > { %3741 = shalt.err (!%p3738_p13)
}
  0x4a   : > { %s3956_s23 = smov 192   ;;  %s3957_s21 = smov 12  }
  0x4b   : > { %3411 = dma.hbm_to_vmem [thread:$0]  (!%p4125_p9), %s4119_s26, 3072, %s4129_s28, %s4133_s17, %s3956_s23, %s3956_s23, %s3957_s21  }
  0x4c   : > { %s2980_s2 = sshll.u32 %s4102_s19, 7  ;;  %s3110_s15 = sshll.u32 %s3952_s24, 11 }
  0x4d   : > { %s4788_s6 = sld [smem:[#allocation27_spill]]  ;;  %s440_s20 = scalar_lea.vmem [#allocation12], %s2980_s2 }
  0x4e   : > { %s447_s4 = sshll.u32 %s440_s20, 4  ;;  %s4789_s10 = sand.u32 1, %s3952_s24   ;;  %s4173_s4 = int_to_ptr.vmem [resolvable:$true] %s447_s4 }
  0x4f   : > { %s4177_s11 = scalar_lea.sflag [#allocation13], %s4789_s10 }
  0x53   : > { %s4169_s30 = scalar_lea.hbm %s4788_s6, %s3110_s15  ;;  %s3747_s21 = scalar_lea.hbm %s4788_s6, 4096 }
  0x54   : > { %s3742_s26 = scalar_lea.hbm %s4169_s30, 2048  ;;  %p3748_p13 = scmp.lt.s32.totalorder %s4169_s30, %s4788_s6 }
  0x55   : > { %p3743_p5 = scmp.ne.s32.totalorder %s4169_s30, %s3742_s26  ;;  %p3749_p0 = scmp.lt.s32.totalorder %s3747_s21, %s3742_s26 }
  0x57   : > { %p3745_p8 = pnand %p3743_p5, %p4139_p2  ;;  %p3750_p4 = por %p3749_p0, %p3748_p13 }
  0x59   : > { %p3746_p10 = pneg %p3745_p8 }
  0x5b   : > { %p3751_p12 = pnand %p3750_p4, %p3746_p10 }
  0x5d   : > { %3754 = shalt.err (!%p3751_p12)
}
  0x5e   : > { %s3755_s10 = scalar_lea.vmem %s4173_s4, 2048  ;;  %s3958_s20 = smov [#allocation12]  }
  0x5f   : > { %p3756_p6 = scmp.ne.s32.totalorder %s4173_s4, %s3755_s10  ;;  %s3760_s28 = sshll.u32 %s3958_s20, 4  ;;  %s3761_s28 = int_to_ptr.vmem [resolvable:$false] %s3760_s28 }
  0x60   : > { %s3762_s23 = scalar_lea.vmem %s3761_s28, 4096  ;;  %p3763_p1 = scmp.lt.s32.totalorder %s4173_s4, %s3761_s28 }
  0x61   : > { %p3758_p7 = pnand %p3756_p6, %p4139_p2  ;;  %p3764_p3 = scmp.lt.s32.totalorder %s3762_s23, %s3755_s10 }
  0x63   : > { %p3759_p11 = pneg %p3758_p7  ;;  %p3765_p5 = por %p3764_p3, %p3763_p1 }
  0x65   : > { %p3766_p8 = pnand %p3765_p5, %p3759_p11 }
  0x67   : > { %3769 = shalt.err (!%p3766_p8)
}
  0x68   : > { %s3959_s26 = smov 128   ;;  %s3960_s21 = smov 8  }
  0x69   : > { %3417 = dma.hbm_to_vmem [thread:$0]  (!%p4125_p9), %s4169_s30, 2048, %s4173_s4, %s4177_s11, %s3959_s26, %s3959_s26, %s3960_s21  }
  0x6a   : > { %s4205_s20 = scalar_lea.hbm %s4749_s7, %s3110_s15  ;;  %s461_s10 = scalar_lea.vmem [#allocation14], %s2980_s2 }
  0x6b   : > { %s468_s28 = sshll.u32 %s461_s10, 4  ;;  %s3961_s23 = smov [#allocation3]   ;;  %s4209_s28 = int_to_ptr.vmem [resolvable:$true] %s468_s28 }
  0x6c   : > { %s349_s6 = sshll.u32 %s3961_s23, 4  ;;  %s3962_s9 = smov [#allocation8]   ;;  %s350_s6 = int_to_ptr.vmem [resolvable:$true] %s349_s6 }
  0x6d   : > { %s374_s0 = sshll.u32 %s3962_s9, 4  ;;  %s3781_s8 = scalar_lea.vmem %s350_s6, 512  ;;  %s375_s0 = int_to_ptr.vmem [resolvable:$true] %s374_s0 }
  0x6e   : > { %p3782_p10 = scmp.ne.s32.totalorder %s350_s6, %s3781_s8  ;;  %p4790_p13 = scmp.ne.s32.totalorder %s4782_s18, 0 }
  0x6f   : > { %p3789_p6 = scmp.lt.s32.totalorder %s350_s6, %s350_s6  ;;  %p3790_p7 = scmp.lt.s32.totalorder %s3781_s8, %s3781_s8 }
  0x70   : > { %p4791_p0 = pneg %p4790_p13 }
  0x71   : > { %p3791_p11 = por %p3790_p7, %p3789_p6 }
  0x72   : > { %p3784_p4 = pnand %p3782_p10, %p4791_p0 }
  0x74   : > { %p3785_p12 = pneg %p3784_p4 }
  0x76   : > { %p3792_p1 = pnand %p3791_p11, %p3785_p12 }
  0x78   : > { %3795 = shalt.err (!%p3792_p1)
}
  0x79   : > { %3401 = dma.hbm_to_vmem [thread:$0]  (!%p4790_p13), %s4743_s1, 512, %s350_s6, [#allocation4], %s3959_s26, %s3959_s26, %s3960_s21  }
  0x7a   : > { %s2977_s9 = sshll.u32 %s4102_s19, 6  ;;  %s3807_s15 = scalar_lea.vmem %s375_s0, 16 }
  0x7b   : > { %p3808_p3 = scmp.ne.s32.totalorder %s375_s0, %s3807_s15  ;;  %p4792_p5 = pmov %p4791_p0 }
  0x7c   : > { %s3814_s8 = scalar_lea.vmem %s375_s0, 32  ;;  %p3815_p0 = scmp.lt.s32.totalorder %s375_s0, %s375_s0 }
  0x7d   : > { %p3810_p8 = pnand %p3808_p3, %p4792_p5  ;;  %p3816_p4 = scmp.lt.s32.totalorder %s3814_s8, %s3807_s15 }
  0x7f   : > { %p3811_p10 = pneg %p3810_p8  ;;  %p3817_p12 = por %p3816_p4, %p3815_p0 }
  0x81   : > { %p3818_p6 = pnand %p3817_p12, %p3811_p10 }
  0x83   : > { %3821 = shalt.err (!%p3818_p6)
}
  0x84   : > { %3407 = dma.hbm_to_vmem [thread:$0]  (!%p4790_p13), %s4745_s3, 16, %s375_s0, [#allocation7]  }
  0x85   : > { %s3109_s6 = sshll.u32 %s3952_s24, 10  ;;  %s419_s16 = scalar_lea.vmem [#allocation11], %s2977_s9 }
  0x86   : > { %s4232_s21 = scalar_lea.hbm %s4747_s5, %s3109_s6  ;;  %s426_s10 = sshll.u32 %s419_s16, 4  ;;  %s4234_s10 = int_to_ptr.vmem [resolvable:$true] %s426_s10 }
  0x87   : > { %s3822_s18 = scalar_lea.hbm %s4232_s21, 1024  ;;  %s3827_s24 = scalar_lea.hbm %s4747_s5, 2048 }
  0x88   : > { %p3823_p7 = scmp.ne.s32.totalorder %s4232_s21, %s3822_s18  ;;  %p3828_p13 = scmp.lt.s32.totalorder %s4232_s21, %s4747_s5 }
  0x89   : > { %p3829_p3 = scmp.lt.s32.totalorder %s3827_s24, %s3822_s18 }
  0x8a   : > { %p3825_p11 = pnand %p3823_p7, %p4139_p2 }
  0x8b   : > { %p3830_p5 = por %p3829_p3, %p3828_p13 }
  0x8c   : > { %p3826_p1 = pneg %p3825_p11 }
  0x8e   : > { %p3831_p8 = pnand %p3830_p5, %p3826_p1 }
  0x90   : > { %3834 = shalt.err (!%p3831_p8)
}
  0x91   : > { %s3835_s9 = scalar_lea.vmem %s4234_s10, 1024  ;;  %s3963_s15 = smov [#allocation11]  }
  0x92   : > { %p3836_p10 = scmp.ne.s32.totalorder %s4234_s10, %s3835_s9  ;;  %s3840_s8 = sshll.u32 %s3963_s15, 4  ;;  %s3841_s8 = int_to_ptr.vmem [resolvable:$false] %s3840_s8 }
  0x93   : > { %s3842_s30 = scalar_lea.vmem %s3841_s8, 2048  ;;  %p3843_p12 = scmp.lt.s32.totalorder %s4234_s10, %s3841_s8 }
  0x94   : > { %p3838_p0 = pnand %p3836_p10, %p4139_p2  ;;  %p3844_p6 = scmp.lt.s32.totalorder %s3842_s30, %s3835_s9 }
  0x96   : > { %p3839_p4 = pneg %p3838_p0  ;;  %p3845_p7 = por %p3844_p6, %p3843_p12 }
  0x98   : > { %p3846_p11 = pnand %p3845_p7, %p3839_p4 }
  0x9a   : > { %3849 = shalt.err (!%p3846_p11)
}
  0x9b   : > { %s3964_s27 = smov 64   ;;  %s3965_s6 = smov 4  }
  0x9c   : > { %3414 = dma.hbm_to_vmem [thread:$0]  (!%p4125_p9), %s4232_s21, 1024, %s4234_s10, %s4133_s17, %s3964_s27, %s3964_s27, %s3965_s6  }
  0x9d   : > { %s3850_s19 = scalar_lea.hbm %s4205_s20, 2048  ;;  %s3855_s18 = scalar_lea.hbm %s4749_s7, 4096 }
  0x9e   : > { %p3851_p1 = scmp.ne.s32.totalorder %s4205_s20, %s3850_s19  ;;  %p3856_p5 = scmp.lt.s32.totalorder %s4205_s20, %s4749_s7 }
  0x9f   : > { %p3857_p8 = scmp.lt.s32.totalorder %s3855_s18, %s3850_s19 }
  0xa0   : > { %p3853_p13 = pnand %p3851_p1, %p4139_p2 }
  0xa1   : > { %p3858_p10 = por %p3857_p8, %p3856_p5 }
  0xa2   : > { %p3854_p3 = pneg %p3853_p13 }
  0xa4   : > { %p3859_p0 = pnand %p3858_p10, %p3854_p3 }
  0xa6   : > { %3862 = shalt.err (!%p3859_p0)
}
  0xa7   : > { %s3863_s17 = scalar_lea.vmem %s4209_s28, 2048  ;;  %s3966_s21 = smov [#allocation14]  }
  0xa8   : > { %p3864_p4 = scmp.ne.s32.totalorder %s4209_s28, %s3863_s17  ;;  %s3868_s10 = sshll.u32 %s3966_s21, 4  ;;  %s3869_s10 = int_to_ptr.vmem [resolvable:$false] %s3868_s10 }
  0xa9   : > { %s3870_s24 = scalar_lea.vmem %s3869_s10, 4096  ;;  %p3871_p7 = scmp.lt.s32.totalorder %s4209_s28, %s3869_s10 }
  0xaa   : > { %p3866_p12 = pnand %p3864_p4, %p4139_p2  ;;  %p3872_p11 = scmp.lt.s32.totalorder %s3870_s24, %s3863_s17 }
  0xac   : > { %p3867_p6 = pneg %p3866_p12  ;;  %p3873_p1 = por %p3872_p11, %p3871_p7 }
  0xae   : > { %p3874_p13 = pnand %p3873_p1, %p3867_p6 }
  0xb0   : > { %3877 = shalt.err (!%p3874_p13)
}
  0xb1   : > { %3420 = dma.hbm_to_vmem [thread:$0]  (!%p4125_p9), %s4205_s20, 2048, %s4209_s28, %s4177_s11, %s3964_s27, %s3964_s27, %s3965_s6  }
  0xb2   : > { %p4793_p2 = scmp.ne.s32.totalorder %s4781_s14, 0 }
  0xb3   : > { %p4794_p3 = scmp.eq.s32.totalorder (!%p4793_p2), %s4058_s25, 0 }
  0xb4   : > { %488 = sbr.rel (%p4793_p2) target bundleno = 4762 (0x129a), region = 68 }
  0xb9   : > { %3919 = dma.done.wait (%p4794_p3), [#allocation4], 512   ;;  %p4795_p5 = pmov %p4794_p3 }
  0xba   : > { %p4796_p8 = pmov %p4794_p3 }
  0xbb   : > { %3921 = vsyncadd (%p4795_p5), [#allocation4], 4294966784 }
  0xbc   : > { %3923 = dma.done.wait (%p4796_p8), [#allocation7], 32   ;;  %p4797_p10 = pmov %p4794_p3 }
  0xbd   : > { %s502_s12 = sand.u32 1, %s4058_s25   ;;  %s504_s11 = sand.u32 1, %s3944_s22  }
  0xbe   : > { %3925 = vsyncadd (%p4797_p10), [#allocation7], 4294967264  ;;  %s3372_s29 = smul.u32 192, %s504_s11  ;;  %s503_s14 = scalar_lea.sflag [#allocation10], %s502_s12 }
  0xbf   : > { %p4798_p9 = scmp.ne.s32.totalorder %s4780_s13, 0 }
  0xc0   : > { %s4296_s20 = scalar_lea.vmem [#allocation9], %s3372_s29 }
  0xc1   : > { %3927 = dma.done.wait (%p4798_p9), %s503_s14, 4096  }
  0xc2   : > { %3929 = vsyncadd (%p4798_p9), %s503_s14, 4294963200  ;;  %s2990_s28 = sshll.u32 %s504_s11, 6  ;;  %s2991_s4 = sshll.u32 %s504_s11, 7 }
  0xc3   : > { %s4302_s2 = scalar_lea.vmem [#allocation11], %s2990_s28  ;;  %s521_s9 = scalar_lea.sflag [#allocation13], %s502_s12 }
  0xc4   : > { %s4304_s15 = scalar_lea.vmem [#allocation12], %s2991_s4 }
  0xc5   : > { %3931 = dma.done.wait (%p4798_p9), %s521_s9, 4096  }
  0xc6   : > { %3933 = vsyncadd (%p4798_p9), %s521_s9, 4294963200  ;;  %p589_p0 = scmp.lt.s32.totalorder %s4058_s25, 1  ;;  %s4799_s19 = sld [smem:[#allocation28_spill]] }
  0xc7   : > { %s4317_s16 = scalar_lea.vmem [#allocation14], %s2991_s4  ;;  %p4800_p4 = scmp.ne.s32.totalorder %s4058_s25, 0 }
  0xc8   : > { %s590_s8 = scalar_select %p589_p0, %s4058_s25, 1 }
  0xc9   : > { %598 = sbr.rel (%p4800_p4) target bundleno = 523 (0x20b), region = 100  ;;  %s4801_s0 = sld [smem:[#allocation24_spill]] (!%p4800_p4) }
  0xca   : > { %s3373_s30 = smul.u32 24, %s590_s8 }
  0xcc   : > { %s4315_s26 = scalar_lea.vmem %s4799_s19, %s3373_s30 }
  0xce   : > { %v2995_v33 = vld [vmem:[#allocation6] ss:$0 sm:$0xff]  ;;  %v2996_v35 = vld [vmem:[#allocation8] ss:$0 sm:$0xff] }
  0xcf   : > { %v599_v0 = vld [vmem:[%s4801_s0] sm:$0xff]  ;;  %v601_v1 = vld [vmem:[%s4801_s0 + $0x10] sm:$0xff]  ;;  %v600_v2 = vld [vmem:[%s4801_s0 + $0x8] sm:$0xff] }
  0xd0   : > { %605 = vadd.xlane.f32.xlu0 %v599_v0  ;;  %609 = vadd.xlane.f32.xlu1 %v601_v1  ;;  %v602_v3 = vld [vmem:[%s4801_s0 + $0x18] sm:$0xff] }
  0xd4   : > { %607 = vadd.xlane.f32.xlu0 %v600_v2  ;;  %611 = vadd.xlane.f32.xlu1 %v602_v3 }
 0x159   : > { %v606_v4 = vpop.xlane.xlu0 %605  ;;  %v610_v5 = vpop.xlane.xlu1 %609 }
 0x15a   : > { %v614_v6 = vmul.f32 0.0078125, %v606_v4  ;;  %v616_v7 = vmul.f32 0.0078125, %v610_v5 }
 0x15c   : > { %v618_v8 = vsub.f32 %v599_v0, %v614_v6  ;;  %v620_v9 = vsub.f32 %v601_v1, %v616_v7 }
 0x15d   : > { %v608_v10 = vpop.xlane.xlu0 %607  ;;  %v612_v11 = vpop.xlane.xlu1 %611 }
 0x15e   : > { %v615_v12 = vmul.f32 0.0078125, %v608_v10  ;;  %v622_v13 = vmul.f32 %v618_v8, %v618_v8  ;;  %v617_v14 = vmul.f32 0.0078125, %v612_v11  ;;  %v624_v17 = vmul.f32 %v620_v9, %v620_v9 }
 0x160   : > { %v619_v15 = vsub.f32 %v600_v2, %v615_v12  ;;  %626 = vadd.xlane.f32.xlu0 %v622_v13  ;;  %v621_v16 = vsub.f32 %v602_v3, %v617_v14 }
 0x162   : > { %v623_v18 = vmul.f32 %v619_v15, %v619_v15  ;;  %v625_v19 = vmul.f32 %v621_v16, %v621_v16 }
 0x164   : > { %630 = vadd.xlane.f32.xlu0 %v624_v17  ;;  %628 = vadd.xlane.f32.xlu1 %v623_v18 }
 0x168   : > { %632 = vadd.xlane.f32.xlu1 %v625_v19 }
 0x1e9   : > { %v627_v20 = vpop.xlane.xlu0 %626 }
 0x1ea   : > { %v634_v21 = vmul.f32 0.0078125, %v627_v20 }
 0x1ec   : > { %v638_v22 = vadd.f32 1e-12, %v634_v21 }
 0x1ed   : > { %v629_v23 = vpop.xlane.xlu1 %628  ;;  %v631_v24 = vpop.xlane.xlu0 %630 }
 0x1ee   : > { %3478 = vrsqrt.f32 %v638_v22  ;;  %v635_v25 = vmul.f32 0.0078125, %v629_v23  ;;  %v636_v26 = vmul.f32 0.0078125, %v631_v24 }
 0x1f0   : > { %v639_v27 = vadd.f32 1e-12, %v635_v25  ;;  %v640_v28 = vadd.f32 1e-12, %v636_v26 }
 0x1f1   : > { %v633_v29 = vpop.xlane.xlu1 %632 }
 0x1f2   : > { %3480 = vrsqrt.f32 %v639_v27  ;;  %v637_v30 = vmul.f32 0.0078125, %v633_v29 }
 0x1f3   : > { %3482 = vrsqrt.f32 %v640_v28 }
 0x1f4   : > { %v641_v31 = vadd.f32 1e-12, %v637_v30 }
 0x1f6   : > { %3484 = vrsqrt.f32 %v641_v31 }
 0x1fb   : > { %v3479_v32 = vpop.eup %3478 }
 0x1fc   : > { %v646_v34 = vmul.f32 %v3479_v32, %v618_v8 }
 0x1fe   : > { %v656_v36 = vmul.f32 %v2995_v33, %v646_v34 }
 0x1ff   : > { %v3481_v37 = vpop.eup %3480 }
 0x200   : > { %v3483_v38 = vpop.eup %3482  ;;  %v666_v39 = vadd.f32 %v2996_v35, %v656_v36  ;;  %v647_v40 = vmul.f32 %v3481_v37, %v619_v15 }
 0x201   : > { %v648_v41 = vmul.f32 %v3483_v38, %v620_v9 }
 0x202   : > { %670 = vst [vmem:[#allocation2 + $0x10] sm:$0xff] %v666_v39  ;;  %v657_v42 = vmul.f32 %v2995_v33, %v647_v40 }
 0x203   : > { %v3485_v43 = vpop.eup %3484  ;;  %v658_v44 = vmul.f32 %v2995_v33, %v648_v41 }
 0x204   : > { %v667_v45 = vadd.f32 %v2996_v35, %v657_v42  ;;  %v649_v46 = vmul.f32 %v3485_v43, %v621_v16 }
 0x205   : > { %v668_v47 = vadd.f32 %v2996_v35, %v658_v44 }
 0x206   : > { %671 = vst [vmem:[#allocation2] sm:$0xff] %v667_v45  ;;  %v659_v48 = vmul.f32 %v2995_v33, %v649_v46 }
 0x207   : > { %672 = vst [vmem:[#allocation2 + $0x18] sm:$0xff] %v668_v47 }
 0x208   : > { %v669_v49 = vadd.f32 %v2996_v35, %v659_v48 }
 0x20a   : > { %673 = vst [vmem:[#allocation2 + $0x8] sm:$0xff] %v669_v49 }
 0x20b PF: > { %v3486_v50 = vld [vmem:[%s4296_s20 + $0xac] ss:$12 sps:$4 sm:$0xff]   ;;  %v3488_v51 = vld [vmem:[%s4296_s20 + $0xa8] ss:$12 sps:$4 sm:$0xff]   ;;  %v3967_v52 = vmov 0   ;;  %v719_v9 = vlaneseq  ;;  %v4357_v12 = vld [vmem:[%s4315_s26] sm:$0xff] }
 0x20c   : > { %891 = vmatprep.mubr.bf16.mxu0 %v3967_v52  ;;  %859 = vmatprep.subr.bf16.mxu0 %v3486_v50  ;;  %v3489_v53 = vld [vmem:[%s4296_s20 + $0x94] ss:$12 sps:$4 sm:$0xff]   ;;  %v3491_v54 = vld [vmem:[%s4296_s20 + $0x90] ss:$12 sps:$4 sm:$0xff]   ;;  %v3494_v56 = vld [vmem:[%s4296_s20 + $0x78] ss:$12 sps:$4 sm:$0xff]  }
 0x20d   : > { %860 = vmatpush1.bf16.msra.mxu0 %v3488_v51  ;;  %v3492_v55 = vld [vmem:[%s4296_s20 + $0x7c] ss:$12 sps:$4 sm:$0xff]   ;;  %v3495_v57 = vld [vmem:[%s4296_s20 + $0x64] ss:$12 sps:$4 sm:$0xff]   ;;  %v3497_v59 = vld [vmem:[%s4296_s20 + $0x60] ss:$12 sps:$4 sm:$0xff]  }
 0x20e   : > { %861 = vmatprep.subr.bf16.mxu0 %v3489_v53  ;;  %v674_v58 = vld [vmem:[#allocation2 + $0x10] sm:$0xff]  ;;  %v675_v60 = vld [vmem:[#allocation2] sm:$0xff]  ;;  %v3500_v63 = vld [vmem:[%s4296_s20 + $0x48] ss:$12 sps:$4 sm:$0xff]   ;;  %v4351_v10 = vshrl.u32 %v719_v9, 7  ;;  %vm983_vm0 = vcmask 261120  }
 0x20f   : > { %v3498_v61 = vld [vmem:[%s4296_s20 + $0x4c] ss:$12 sps:$4 sm:$0xff]   ;;  %v685_v62 = vpack.c.bf16 %v675_v60, %v674_v58  ;;  %v3501_v0 = vld [vmem:[%s4296_s20 + $0x34] ss:$12 sps:$4 sm:$0xff]   ;;  %v3503_v1 = vld [vmem:[%s4296_s20 + $0x30] ss:$12 sps:$4 sm:$0xff]  }
 0x210   : > { %v3504_v2 = vld [vmem:[%s4296_s20 + $0x1c] ss:$12 sps:$4 sm:$0xff]   ;;  %v3506_v3 = vld [vmem:[%s4296_s20 + $0x18] ss:$12 sps:$4 sm:$0xff]   ;;  %v3509_v5 = vld [vmem:[%s4296_s20] ss:$12 sps:$4 sm:$0xff]  }
 0x211   : > { %862 = vmatpush1.bf16.msra.mxu0 %v3491_v54  ;;  %3230 = vmatprep.mubr.bf16.mxu1 %v685_v62  ;;  %v3507_v4 = vld [vmem:[%s4296_s20 + $0x4] ss:$12 sps:$4 sm:$0xff]   ;;  %v676_v6 = vld [vmem:[#allocation2 + $0x18] sm:$0xff]  ;;  %v4354_v11 = vsub.s32 0, %v4351_v10  ;;  %v3512_v40 = vld [vmem:[%s4296_s20 + $0x80] ss:$12 sps:$4 sm:$0xff]  }
 0x212   : > { %863 = vmatprep.subr.bf16.mxu0 %v3492_v55  ;;  %v677_v7 = vld [vmem:[#allocation2 + $0x8] sm:$0xff]  ;;  %v3510_v38 = vld [vmem:[%s4296_s20 + $0xb0] ss:$12 sps:$4 sm:$0xff]   ;;  %v3516_v44 = vld [vmem:[%s4296_s20 + $0x20] ss:$12 sps:$4 sm:$0xff]   ;;  %s3968_s11 = smov 96  }
 0x213   : > { %v686_v8 = vpack.c.bf16 %v677_v7, %v676_v6  ;;  %v722_v14 = vrot.slane %v4357_v12, %v4354_v11  ;;  %v683_v22 = vld [vmem:[%s4315_s26 + $0x8] sm:$0xff]  ;;  %3214 = vmatprep.subr.bf16.mxu1 %v3510_v38  ;;  %v3514_v42 = vld [vmem:[%s4296_s20 + $0x50] ss:$12 sps:$4 sm:$0xff]   ;;  %v4396_v55 = vld [vmem:[#allocation3 + $0x18] sm:$0xff]  ;;  %s3969_s29 = smov 64   ;;  %s3970_s14 = smov 32  }
 0x214   : > { %v726_v25 = vrot.slane %v683_v22, %v4354_v11  ;;  %v3511_v39 = vld [vmem:[%s4296_s20 + $0x98] ss:$12 sps:$4 sm:$0xff]   ;;  %3215 = vmatpush3.bf16.msra.mxu1 %v3510_v38  ;;  %v3513_v41 = vld [vmem:[%s4296_s20 + $0x68] ss:$12 sps:$4 sm:$0xff]   ;;  %v4391_v47 = vld [vmem:[#allocation3 + $0x10] sm:$0xff]  ;;  %p3085_p12 = scmp.ne.s32.totalorder %s4058_s25, 1 }
 0x215   : > { %864 = vmatpush1.bf16.msra.mxu0 %v3494_v56  ;;  %3216 = vmatprep.subr.bf16.mxu1 %v3511_v39  ;;  %v3515_v43 = vld [vmem:[%s4296_s20 + $0x38] ss:$12 sps:$4 sm:$0xff]   ;;  %v3517_v45 = vld [vmem:[%s4296_s20 + $0x8] ss:$12 sps:$4 sm:$0xff]   ;;  %v4393_v50 = vld [vmem:[#allocation3] sm:$0xff]  ;;  %s4802_s4 = sld [smem:[#allocation29_spill]] (!%p3085_p12) }
 0x216   : > { %865 = vmatprep.subr.bf16.mxu0 %v3495_v57  ;;  %v4400_v60 = vld [vmem:[#allocation3 + $0x8] sm:$0xff]  ;;  %s4803_s24 = sld [smem:[#allocation31_spill]] (!%p3085_p12) }
 0x217   : > { %s4805_s8 = sld [smem:[#allocation30_spill]] (!%p3085_p12) }
 0x218   : > { %3217 = vmatpush3.bf16.msra.mxu1 %v3511_v39 }
 0x219   : > { %866 = vmatpush1.bf16.msra.mxu0 %v3497_v59  ;;  %3218 = vmatprep.subr.bf16.mxu1 %v3512_v40 }
 0x21a   : > { %867 = vmatprep.subr.bf16.mxu0 %v3498_v61 }
 0x21c   : > { %3219 = vmatpush3.bf16.msra.mxu1 %v3512_v40  ;;  %s4804_s12 = smov (!%p3085_p12), %s4803_s24 }
 0x21d   : > { %868 = vmatpush1.bf16.msra.mxu0 %v3500_v63  ;;  %3220 = vmatprep.subr.bf16.mxu1 %v3513_v41 }
 0x21e   : > { %869 = vmatprep.subr.bf16.mxu0 %v3501_v0 }
 0x220   : > { %3221 = vmatpush3.bf16.msra.mxu1 %v3513_v41 }
 0x221   : > { %870 = vmatpush1.bf16.msra.mxu0 %v3503_v1  ;;  %3222 = vmatprep.subr.bf16.mxu1 %v3514_v42 }
 0x222   : > { %871 = vmatprep.subr.bf16.mxu0 %v3504_v2 }
 0x224   : > { %3223 = vmatpush3.bf16.msra.mxu1 %v3514_v42 }
 0x225   : > { %872 = vmatpush1.bf16.msra.mxu0 %v3506_v3  ;;  %3224 = vmatprep.subr.bf16.mxu1 %v3515_v43  ;;  %v684_v3 = vld [vmem:[%s4315_s26 + $0x10] sm:$0xff] }
 0x226   : > { %873 = vmatprep.subr.bf16.mxu0 %v3507_v4  ;;  %v730_v4 = vrot.slane %v684_v3, %v4354_v11  ;;  %v3519_v3 = vld [vmem:[%s4302_s2] sm:$0xff]  }
 0x228   : > { %3225 = vmatpush3.bf16.msra.mxu1 %v3515_v43 }
 0x229   : > { %874 = vmatpush1.bf16.msra.mxu0 %v3509_v5  ;;  %3226 = vmatprep.subr.bf16.mxu1 %v3516_v44 }
 0x22c   : > { %892 = vmatmul.mubr.bf16.vlgmr.msra.gmra.mxu0 %v685_v62  ;;  %3227 = vmatpush3.bf16.msra.mxu1 %v3516_v44 }
 0x22d   : > { %901 = vmatprep.mubr.bf16.mxu0 %v3967_v52  ;;  %3228 = vmatprep.subr.bf16.mxu1 %v3517_v45 }
 0x230   : > { %3229 = vmatpush3.bf16.msra.mxu1 %v3517_v45 }
 0x233   : > { %3231 = vmatmul.mubr.bf16.vlgmr.msra.gmra.mxu1 %v686_v8 }
 0x234   : > { %902 = vmatmul.mubr.bf16.gmra.mxu0 %v686_v8 }
 0x2ec   : > { %v893_v13 = vpop.f32.mrf.mxu0 }
 0x2ed   : > { %v894_v17 = vadd.f32 %v893_v13, %v722_v14 }
 0x2ee   : > { %v895_v15 = vpop.f32.mrf.mxu0 }
 0x2ef   : > { %v896_v30 = vadd.f32 %v895_v15, %v726_v25 }
 0x2f0   : > { %v897_v16 = vpop.f32.mrf.mxu0 }
 0x2f1   : > { %v898_v18 = vadd.f32 %v897_v16, %v722_v14 }
 0x2f2   : > { %v899_v19 = vpop.f32.mrf.mxu0 }
 0x2f3   : > { %v4361_v20 = vpack.c.bf16 %v898_v18, %v894_v17  ;;  %v900_v27 = vadd.f32 %v899_v19, %v726_v25  ;;  %v3232_v5 = vpop.f32.mrf.mxu1 }
 0x2f4   : > { %v903_v21 = vpop.f32.mrf.mxu0  ;;  %v955_v7 = vadd.f32 %v3232_v5, %v730_v4 }
 0x2f5   : > { %3238 = vmatprep.mubr.msk.bf16.mxu0 %vm983_vm0, %v4361_v20  ;;  %v4369_v32 = vpack.c.bf16 %v900_v27, %v896_v30  ;;  %v904_v36 = vadd.f32 %v903_v21, %v722_v14  ;;  %v946_v6 = vpop.f32.mrf.mxu1 }
 0x2f6   : > { %v905_v23 = vpop.f32.mrf.mxu0 }
 0x2f7   : > { %v906_v28 = vadd.f32 %v905_v23, %v726_v25  ;;  %v991_v34 = vsel %vm983_vm0, %v4369_v32, 0  ;;  %v3233_v8 = vpop.f32.mrf.mxu1 }
 0x2f8   : > { %v907_v24 = vpop.f32.mrf.mxu0  ;;  %v958_v9 = vadd.f32 %v3233_v8, %v730_v4 }
 0x2f9   : > { %v908_v35 = vadd.f32 %v907_v24, %v722_v14  ;;  %v949_v38 = vpop.f32.mrf.mxu1 }
 0x2fa   : > { %v909_v26 = vpop.f32.mrf.mxu0  ;;  %v4409_v13 = vpack.c.bf16 %v958_v9, %v955_v7  ;;  %v950_v39 = vadd.f32 %v949_v38, %v730_v4 }
 0x2fb   : > { %v910_v29 = vadd.f32 %v909_v26, %v726_v25  ;;  %v4379_v37 = vpack.c.bf16 %v908_v35, %v904_v36  ;;  %v947_v36 = vadd.f32 %v946_v6, %v730_v4 }
 0x2fc   : > { %3242 = vmatprep.subr.bf16.mxu1 %v4409_v13 }
 0x2fd   : > { %v4367_v31 = vpack.c.bf16 %v910_v29, %v906_v28  ;;  %3243 = vmatpush3.bf16.msra.mxu1 %v4409_v13  ;;  %v4417_v40 = vpack.c.bf16 %v950_v39, %v947_v36 }
 0x2ff   : > { %3362 = vmatprep.subr.msk.bf16.mxu0 %vm983_vm0, %v4367_v31  ;;  %v994_v33 = vsel %vm983_vm0, %v4367_v31, 0  ;;  %3244 = vmatprep.subr.bf16.mxu1 %v4417_v40 }
 0x300   : > { %3235 = vmatpush3.bf16.xpose.msra.mxu0 %v994_v33 }
 0x301   : > { %3363 = vmatprep.subr.msk.bf16.mxu0 %vm983_vm0, %v4369_v32  ;;  %3245 = vmatpush3.bf16.msra.mxu1 %v4417_v40 }
 0x308   : > { %3237 = vmatpush3.bf16.xpose.msra.mxu0 %v991_v34 }
 0x30f   : > { %3239 = vmatmul.mubr.msk.bf16.vlgmr.msra.gmra.mxu0 %vm983_vm0, %v4379_v37 }
 0x3cf   : > { %v3240_v46 = vpop.f32.mrf.mxu0 }
 0x3d0   : > { %v1047_v48 = vmul.f32 0.17677669, %v3240_v46 }
 0x3d1   : > { %v1030_v49 = vpop.f32.mrf.mxu0 }
 0x3d2   : > { %v1045_v51 = vmul.f32 0.17677669, %v1030_v49  ;;  %v1051_v53 = vadd.f32 %v1047_v48, %v4391_v47 }
 0x3d3   : > { %v3241_v54 = vpop.f32.mrf.mxu0 }
 0x3d4   : > { %v1048_v56 = vmul.f32 0.17677669, %v3241_v54  ;;  %v1059_v57 = vsel %vm983_vm0, %v1051_v53, -inf  ;;  %v1049_v58 = vadd.f32 %v1045_v51, %v4393_v50 }
 0x3d5   : > { %1060 = vmax.xlane.f32.xlu1 %v1059_v57  ;;  %v1033_v59 = vpop.f32.mrf.mxu0 }
 0x3d6   : > { %v1046_v61 = vmul.f32 0.17677669, %v1033_v59  ;;  %v1053_v62 = vsel %vm983_vm0, %v1049_v58, -inf  ;;  %v1052_v63 = vadd.f32 %v1048_v56, %v4396_v55 }
 0x3d7   : > { %1054 = vmax.xlane.f32.xlu0 %v1053_v62 }
 0x3d8   : > { %v1062_v0 = vsel %vm983_vm0, %v1052_v63, -inf  ;;  %v1050_v1 = vadd.f32 %v1046_v61, %v4400_v60 }
 0x3d9   : > { %1063 = vmax.xlane.f32.xlu1 %v1062_v0 }
 0x3da   : > { %v1056_v2 = vsel %vm983_vm0, %v1050_v1, -inf }
 0x3db   : > { %1057 = vmax.xlane.f32.xlu0 %v1056_v2  ;;  %v3518_v2 = vld [vmem:[%s4302_s2 + $0x8] sm:$0xff]  }
 0x45e   : > { %v1061_v14 = vpop.xlane.xlu1 %1060 }
 0x45f   : > { %v1067_v15 = vsub.f32 %v1051_v53, %v1061_v14 }
 0x460   : > { %v1055_v16 = vpop.xlane.xlu0 %1054 }
 0x461   : > { %v1073_v17 = vmul.f32 1.442695, %v1067_v15  ;;  %v1065_v18 = vsub.f32 %v1049_v58, %v1055_v16 }
 0x462   : > { %v1064_v19 = vpop.xlane.xlu1 %1063 }
 0x463   : > { %3566 = vpow2.f32 %v1073_v17  ;;  %v1069_v21 = vmul.f32 1.442695, %v1065_v18  ;;  %v1068_v11 = vsub.f32 %v1052_v63, %v1064_v19 }
 0x464   : > { %v1058_v22 = vpop.xlane.xlu0 %1057 }
 0x465   : > { %3568 = vpow2.f32 %v1069_v21  ;;  %v1066_v23 = vsub.f32 %v1050_v1, %v1058_v22  ;;  %v1075_v24 = vmul.f32 1.442695, %v1068_v11 }
 0x467   : > { %v1071_v25 = vmul.f32 1.442695, %v1066_v23 }
 0x469   : > { %3570 = vpow2.f32 %v1071_v25 }
 0x46a   : > { %3572 = vpow2.f32 %v1075_v24 }
 0x470   : > { %v3567_v26 = vpop.eup %3566 }
 0x471   : > { %v1083_v27 = vsel %vm983_vm0, %v3567_v26, 0.0 }
 0x472   : > { %v3569_v28 = vpop.eup %3568  ;;  %1084 = vadd.xlane.f32.xlu0 %v1083_v27 }
 0x473   : > { %v1077_v29 = vsel %vm983_vm0, %v3569_v28, 0.0 }
 0x476   : > { %v3571_v30 = vpop.eup %3570  ;;  %1078 = vadd.xlane.f32.xlu0 %v1077_v29 }
 0x477   : > { %v1080_v33 = vsel %vm983_vm0, %v3571_v30, 0.0  ;;  %v3573_v34 = vpop.eup %3572 }
 0x478   : > { %1081 = vadd.xlane.f32.xlu1 %v1080_v33  ;;  %v1086_v35 = vsel %vm983_vm0, %v3573_v34, 0.0 }
 0x47c   : > { %1087 = vadd.xlane.f32.xlu1 %v1086_v35 }
 0x48c   : > { %1166 = vrot.lane.b32.xlu0 %v4367_v31, %s3968_s11 }
 0x48d   : > { %1164 = vrot.lane.b32.xlu1 %v4369_v32, %s3968_s11 }
 0x491   : > { %1158 = vrot.lane.b32.xlu1 %v4361_v20, %s3968_s11 }
 0x495   : > { %1160 = vrot.lane.b32.xlu1 %v4379_v37, %s3968_s11 }
 0x4fb   : > { %v1085_v41 = vpop.xlane.xlu0 %1084 }
 0x4ff   : > { %v1079_v42 = vpop.xlane.xlu0 %1078 }
 0x500   : > { %3574 = vrcp.f32 %v1079_v42 }
 0x501   : > { %v1082_v43 = vpop.xlane.xlu1 %1081 }
 0x502   : > { %3576 = vrcp.f32 %v1082_v43 }
 0x503   : > { %v1167_v44 = vpop.permute.xlu0 %1166  ;;  %3578 = vrcp.f32 %v1085_v41 }
 0x504   : > { %3364 = vmatprep.subr.msk.bf16.mxu1 %vm983_vm0, %v1167_v44  ;;  %v1178_v62 = vsel %vm983_vm0, %v1167_v44, 0 }
 0x505   : > { %v1088_v45 = vpop.xlane.xlu1 %1087 }
 0x506   : > { %3580 = vrcp.f32 %v1088_v45 }
 0x509   : > { %v1165_v54 = vpop.permute.xlu1 %1164 }
 0x50a   : > { %v1175_v0 = vsel %vm983_vm0, %v1165_v54, 0 }
 0x50d   : > { %v3575_v46 = vpop.eup %3574  ;;  %v1159_v63 = vpop.permute.xlu1 %1158 }
 0x50e   : > { %v1093_v49 = vmul.f32 %v3575_v46, %v3569_v28 }
 0x50f   : > { %v3577_v48 = vpop.eup %3576 }
 0x510   : > { %v1094_v51 = vmul.f32 %v3577_v48, %v3571_v30  ;;  %v3579_v53 = vpop.eup %3578 }
 0x511   : > { %v1095_v58 = vmul.f32 %v3579_v53, %v3567_v26  ;;  %v1161_v1 = vpop.permute.xlu1 %1160 }
 0x512   : > { %v1097_v56 = vpack.c.bf16 %v1094_v51, %v1093_v49 }
 0x513   : > { %v3581_v57 = vpop.eup %3580 }
 0x514   : > { %3246 = vmatprep.mubr.msk.bf16.mxu1 %vm983_vm0, %v1097_v56  ;;  %v1096_v59 = vmul.f32 %v3581_v57, %v3573_v34 }
 0x516   : > { %v1098_v61 = vpack.c.bf16 %v1096_v59, %v1095_v58 }
 0x518   : > { %3247 = vmatmul.mubr.msk.bf16.vlgmr.msra.gmra.mxu1 %vm983_vm0, %v1098_v61 }
 0x519   : > { %3251 = vmatpush3.bf16.xpose.msra.mxu1 %v1178_v62  ;;  %3254 = vmatprep.mubr.msk.bf16.mxu1 %vm983_vm0, %v1159_v63  ;;  %v3520_v63 = vld [vmem:[%s4302_s2 + $0x18] sm:$0xff]  }
 0x51a   : > { %3365 = vmatprep.subr.msk.bf16.mxu1 %vm983_vm0, %v1165_v54 }
 0x521   : > { %3253 = vmatpush3.bf16.xpose.msra.mxu1 %v1175_v0 }
 0x522   : > { %3274 = vmatprep.subr.bf16.mxu1 %v3518_v2 }
 0x528   : > { %3255 = vmatmul.mubr.msk.bf16.vlgmr.msra.gmra.mxu1 %vm983_vm0, %v1161_v1 }
 0x529   : > { %3275 = vmatpush3.bf16.msra.mxu1 %v3518_v2 }
 0x52a   : > { %3276 = vmatprep.subr.bf16.mxu1 %v3519_v3 }
 0x52d   : > { %3277 = vmatpush3.bf16.msra.mxu1 %v3519_v3 }
 0x5d8   : > { %v3248_v4 = vpop.f32.mrf.mxu1 }
 0x5da   : > { %v1139_v5 = vpop.f32.mrf.mxu1 }
 0x5dc   : > { %v3249_v6 = vpop.f32.mrf.mxu1 }
 0x5dd   : > { %v1155_v9 = vpack.c.bf16 %v3249_v6, %v3248_v4 }
 0x5de   : > { %v1142_v7 = vpop.f32.mrf.mxu1 }
 0x5df   : > { %v1154_v8 = vpack.c.bf16 %v1142_v7, %v1139_v5 }
 0x5e1   : > { %3278 = vmatprep.mubr.msk.bf16.mxu1 %vm983_vm0, %v1154_v8  ;;  %v3521_v8 = vld [vmem:[%s4302_s2 + $0x10] sm:$0xff]  }
 0x5e2   : > { %3279 = vmatmul.mubr.msk.bf16.vlgmr.msra.gmra.mxu1 %vm983_vm0, %v1155_v9 }
 0x5e8   : > { %v3256_v14 = vpop.f32.mrf.mxu1 }
 0x5e9   : > { %v1231_v16 = vmul.f32 0.17677669, %v3256_v14 }
 0x5ea   : > { %v1214_v15 = vpop.f32.mrf.mxu1 }
 0x5eb   : > { %v1229_v17 = vmul.f32 0.17677669, %v1214_v15  ;;  %v1235_v24 = vadd.f32 %v1231_v16, %v4391_v47 }
 0x5ec   : > { %v3257_v18 = vpop.f32.mrf.mxu1 }
 0x5ed   : > { %v1233_v19 = vadd.f32 %v1229_v17, %v4393_v50  ;;  %v1232_v11 = vmul.f32 0.17677669, %v3257_v18  ;;  %v1243_v26 = vsel %vm983_vm0, %v1235_v24, -inf }
 0x5ee   : > { %v1217_v21 = vpop.f32.mrf.mxu1 }
 0x5ef   : > { %v1230_v22 = vmul.f32 0.17677669, %v1217_v21  ;;  %v1237_v23 = vsel %vm983_vm0, %v1233_v19, -inf  ;;  %v1236_v28 = vadd.f32 %v1232_v11, %v4396_v55 }
 0x5f0   : > { %1238 = vmax.xlane.f32.xlu0 %v1237_v23 }
 0x5f1   : > { %v1234_v25 = vadd.f32 %v1230_v22, %v4400_v60  ;;  %v1246_v29 = vsel %vm983_vm0, %v1236_v28, -inf }
 0x5f3   : > { %v1240_v27 = vsel %vm983_vm0, %v1234_v25, -inf }
 0x5f4   : > { %1244 = vmax.xlane.f32.xlu0 %v1243_v26  ;;  %1241 = vmax.xlane.f32.xlu1 %v1240_v27 }
 0x5f8   : > { %1247 = vmax.xlane.f32.xlu0 %v1246_v29 }
 0x679   : > { %v1239_v30 = vpop.xlane.xlu0 %1238 }
 0x67a   : > { %v1249_v33 = vsub.f32 %v1233_v19, %v1239_v30 }
 0x67c   : > { %v1253_v38 = vmul.f32 1.442695, %v1249_v33 }
 0x67d   : > { %v1245_v34 = vpop.xlane.xlu0 %1244  ;;  %v1242_v35 = vpop.xlane.xlu1 %1241 }
 0x67e   : > { %v1251_v36 = vsub.f32 %v1235_v24, %v1245_v34  ;;  %v1250_v41 = vsub.f32 %v1234_v25, %v1242_v35 }
 0x680   : > { %v1257_v39 = vmul.f32 1.442695, %v1251_v36  ;;  %v1255_v44 = vmul.f32 1.442695, %v1250_v41 }
 0x681   : > { %v1248_v42 = vpop.xlane.xlu0 %1247 }
 0x682   : > { %3582 = vpow2.f32 %v1257_v39  ;;  %v1252_v43 = vsub.f32 %v1236_v28, %v1248_v42 }
 0x683   : > { %3584 = vpow2.f32 %v1253_v38 }
 0x684   : > { %v1259_v45 = vmul.f32 1.442695, %v1252_v43 }
 0x686   : > { %3586 = vpow2.f32 %v1259_v45 }
 0x687   : > { %3588 = vpow2.f32 %v1255_v44 }
 0x68f   : > { %v3583_v46 = vpop.eup %3582 }
 0x690   : > { %v1267_v48 = vsel %vm983_vm0, %v3583_v46, 0.0  ;;  %v3585_v49 = vpop.eup %3584 }
 0x691   : > { %1268 = vadd.xlane.f32.xlu0 %v1267_v48  ;;  %v1261_v53 = vsel %vm983_vm0, %v3585_v49, 0.0 }
 0x693   : > { %v3587_v51 = vpop.eup %3586 }
 0x694   : > { %v1270_v54 = vsel %vm983_vm0, %v3587_v51, 0.0  ;;  %v3589_v56 = vpop.eup %3588 }
 0x695   : > { %1262 = vadd.xlane.f32.xlu0 %v1261_v53  ;;  %1271 = vadd.xlane.f32.xlu1 %v1270_v54  ;;  %v1264_v57 = vsel %vm983_vm0, %v3589_v56, 0.0 }
 0x699   : > { %1265 = vadd.xlane.f32.xlu1 %v1264_v57 }
 0x6aa   : > { %1285 = vrot.lane.b32.xlu1 %v4417_v40, %s3968_s11 }
 0x6ab   : > { %1287 = vrot.lane.b32.xlu0 %v4409_v13, %s3968_s11 }
 0x6ae   : > { %1488 = vrot.lane.b32.xlu1 %v4367_v31, %s3969_s29 }
 0x6af   : > { %1482 = vrot.lane.b32.xlu0 %v4361_v20, %s3969_s29 }
 0x6b2   : > { %1486 = vrot.lane.b32.xlu1 %v4369_v32, %s3969_s29 }
 0x6b3   : > { %1745 = vrot.lane.b32.xlu0 %v4367_v31, %s3970_s14 }
 0x6b6   : > { %1484 = vrot.lane.b32.xlu1 %v4379_v37, %s3969_s29 }
 0x6b7   : > { %1739 = vrot.lane.b32.xlu0 %v4361_v20, %s3970_s14 }
 0x6ba   : > { %1743 = vrot.lane.b32.xlu1 %v4369_v32, %s3970_s14 }
 0x6be   : > { %1741 = vrot.lane.b32.xlu1 %v4379_v37, %s3970_s14 }
 0x71a   : > { %v1269_v58 = vpop.xlane.xlu0 %1268 }
 0x71e   : > { %v1263_v59 = vpop.xlane.xlu0 %1262  ;;  %v1272_v61 = vpop.xlane.xlu1 %1271 }
 0x71f   : > { %3590 = vrcp.f32 %v1272_v61 }
 0x720   : > { %3592 = vrcp.f32 %v1263_v59 }
 0x721   : > { %3594 = vrcp.f32 %v1269_v58 }
 0x722   : > { %v1288_v31 = vpop.permute.xlu0 %1287  ;;  %v1266_v62 = vpop.xlane.xlu1 %1265 }
 0x723   : > { %3596 = vrcp.f32 %v1266_v62  ;;  %3258 = vmatprep.subr.bf16.mxu0 %v1288_v31 }
 0x724   : > { %3259 = vmatpush3.bf16.msra.mxu0 %v1288_v31 }
 0x726   : > { %v1286_v20 = vpop.permute.xlu1 %1285  ;;  %v1483_v21 = vpop.permute.xlu0 %1482 }
 0x727   : > { %3260 = vmatprep.subr.bf16.mxu0 %v1286_v20 }
 0x728   : > { %3261 = vmatpush3.bf16.msra.mxu0 %v1286_v20 }
 0x729   : > { %3266 = vmatprep.subr.bf16.mxu0 %v3520_v63 }
 0x72a   : > { %v1489_v9 = vpop.permute.xlu1 %1488  ;;  %v1746_v24 = vpop.permute.xlu0 %1745 }
 0x72b   : > { %v1500_v11 = vsel %vm983_vm0, %v1489_v9, 0  ;;  %v1757_v26 = vsel %vm983_vm0, %v1746_v24, 0 }
 0x72c   : > { %v3591_v32 = vpop.eup %3590 }
 0x72d   : > { %v3593_v0 = vpop.eup %3592  ;;  %v1280_v2 = vmul.f32 %v3591_v32, %v3587_v51 }
 0x72e   : > { %v3595_v37 = vpop.eup %3594  ;;  %v1277_v3 = vmul.f32 %v3593_v0, %v3585_v49  ;;  %v1487_v22 = vpop.permute.xlu1 %1486 }
 0x72f   : > { %v1279_v5 = vmul.f32 %v3595_v37, %v3583_v46  ;;  %v1497_v23 = vsel %vm983_vm0, %v1487_v22, 0  ;;  %v1740_v27 = vpop.permute.xlu0 %1739 }
 0x730   : > { %v3597_v1 = vpop.eup %3596 }
 0x731   : > { %v1278_v4 = vmul.f32 %v3597_v1, %v3589_v56  ;;  %v1282_v7 = vpack.c.bf16 %v1280_v2, %v1279_v5 }
 0x732   : > { %v1485_v25 = vpop.permute.xlu1 %1484 }
 0x733   : > { %v1281_v6 = vpack.c.bf16 %v1278_v4, %v1277_v3 }
 0x735   : > { %3262 = vmatprep.mubr.msk.bf16.mxu0 %vm983_vm0, %v1281_v6 }
 0x736   : > { %3263 = vmatmul.mubr.msk.bf16.vlgmr.msra.gmra.mxu0 %vm983_vm0, %v1282_v7  ;;  %v1744_v28 = vpop.permute.xlu1 %1743 }
 0x737   : > { %3267 = vmatpush3.bf16.msra.mxu0 %v3520_v63  ;;  %v1754_v29 = vsel %vm983_vm0, %v1744_v28, 0 }
 0x738   : > { %3268 = vmatprep.subr.bf16.mxu0 %v3521_v8 }
 0x73a   : > { %v1742_v30 = vpop.permute.xlu1 %1741 }
 0x73b   : > { %3269 = vmatpush3.bf16.msra.mxu0 %v3521_v8 }
 0x73c   : > { %3366 = vmatprep.subr.msk.bf16.mxu0 %vm983_vm0, %v1489_v9 }
 0x7f6   : > { %v3264_v14 = vpop.f32.mrf.mxu0 }
 0x7f8   : > { %v1331_v15 = vpop.f32.mrf.mxu0 }
 0x7fa   : > { %v3265_v16 = vpop.f32.mrf.mxu0 }
 0x7fb   : > { %v1347_v19 = vpack.c.bf16 %v3265_v16, %v3264_v14 }
 0x7fc   : > { %v1334_v17 = vpop.f32.mrf.mxu0 }
 0x7fd   : > { %v1346_v18 = vpack.c.bf16 %v1334_v17, %v1331_v15 }
 0x7ff   : > { %3270 = vmatprep.mubr.msk.bf16.mxu0 %vm983_vm0, %v1346_v18 }
 0x800   : > { %3271 = vmatmul.mubr.msk.bf16.vlgmr.msra.gmra.mxu0 %vm983_vm0, %v1347_v19 }
 0x801   : > { %3283 = vmatpush3.bf16.xpose.msra.mxu0 %v1500_v11  ;;  %3286 = vmatprep.mubr.msk.bf16.mxu0 %vm983_vm0, %v1483_v21 }
 0x802   : > { %3367 = vmatprep.subr.msk.bf16.mxu0 %vm983_vm0, %v1487_v22 }
 0x809   : > { %3285 = vmatpush3.bf16.xpose.msra.mxu0 %v1497_v23 }
 0x80a   : > { %3368 = vmatprep.subr.msk.bf16.mxu0 %vm983_vm0, %v1746_v24 }
 0x810   : > { %3287 = vmatmul.mubr.msk.bf16.vlgmr.msra.gmra.mxu0 %vm983_vm0, %v1485_v25 }
 0x811   : > { %3307 = vmatpush3.bf16.xpose.msra.mxu0 %v1757_v26  ;;  %3310 = vmatprep.mubr.msk.bf16.mxu0 %vm983_vm0, %v1740_v27 }
 0x812   : > { %3369 = vmatprep.subr.msk.bf16.mxu0 %vm983_vm0, %v1744_v28 }
 0x819   : > { %3309 = vmatpush3.bf16.xpose.msra.mxu0 %v1754_v29 }
 0x820   : > { %3311 = vmatmul.mubr.msk.bf16.vlgmr.msra.gmra.mxu0 %vm983_vm0, %v1742_v30 }
 0x821   : > { %2207 = vmatprep.mubr.bf16.mxu0 %v3967_v52 }
 0x8c0   : > { %v4492_v33 = vpop.f32.mrf.mxu0 }
 0x8c2   : > { %v4494_v34 = vpop.f32.mrf.mxu0 }
 0x8c4   : > { %v4496_v35 = vpop.f32.mrf.mxu0 }
 0x8c6   : > { %v4498_v36 = vpop.f32.mrf.mxu0 }
 0x8d0   : > { %v3288_v38 = vpop.f32.mrf.mxu0 }
 0x8d1   : > { %v1553_v41 = vmul.f32 0.17677669, %v3288_v38 }
 0x8d2   : > { %v1536_v39 = vpop.f32.mrf.mxu0 }
 0x8d3   : > { %v1551_v42 = vmul.f32 0.17677669, %v1536_v39  ;;  %v1557_v51 = vadd.f32 %v1553_v41, %v4391_v47 }
 0x8d4   : > { %v3289_v43 = vpop.f32.mrf.mxu0 }
 0x8d5   : > { %v1555_v44 = vadd.f32 %v1551_v42, %v4393_v50  ;;  %v1554_v46 = vmul.f32 0.17677669, %v3289_v43  ;;  %v1565_v54 = vsel %vm983_vm0, %v1557_v51, -inf }
 0x8d6   : > { %v1539_v45 = vpop.f32.mrf.mxu0 }
 0x8d7   : > { %v1552_v48 = vmul.f32 0.17677669, %v1539_v45  ;;  %v1559_v49 = vsel %vm983_vm0, %v1555_v44, -inf  ;;  %v1558_v57 = vadd.f32 %v1554_v46, %v4396_v55 }
 0x8d8   : > { %1560 = vmax.xlane.f32.xlu0 %v1559_v49 }
 0x8d9   : > { %v1556_v53 = vadd.f32 %v1552_v48, %v4400_v60  ;;  %v1568_v58 = vsel %vm983_vm0, %v1558_v57, -inf }
 0x8db   : > { %v1562_v56 = vsel %vm983_vm0, %v1556_v53, -inf }
 0x8dc   : > { %1566 = vmax.xlane.f32.xlu0 %v1565_v54  ;;  %1563 = vmax.xlane.f32.xlu1 %v1562_v56 }
 0x8e0   : > { %1569 = vmax.xlane.f32.xlu0 %v1568_v58  ;;  %v3312_v16 = vpop.f32.mrf.mxu0 }
 0x8e1   : > { %v1810_v11 = vmul.f32 0.17677669, %v3312_v16 }
 0x8e2   : > { %v1793_v17 = vpop.f32.mrf.mxu0 }
 0x8e3   : > { %v1808_v22 = vmul.f32 0.17677669, %v1793_v17  ;;  %v1814_v26 = vadd.f32 %v1810_v11, %v4391_v47 }
 0x8e4   : > { %v3313_v18 = vpop.f32.mrf.mxu0 }
 0x8e5   : > { %v1811_v24 = vmul.f32 0.17677669, %v3313_v18  ;;  %v1812_v27 = vadd.f32 %v1808_v22, %v4393_v50  ;;  %v1822_v28 = vsel %vm983_vm0, %v1814_v26, -inf }
 0x8e6   : > { %v1796_v19 = vpop.f32.mrf.mxu0 }
 0x8e7   : > { %v1809_v21 = vmul.f32 0.17677669, %v1796_v19  ;;  %v1816_v29 = vsel %vm983_vm0, %v1812_v27, -inf  ;;  %v1815_v30 = vadd.f32 %v1811_v24, %v4396_v55 }
 0x8e9   : > { %v1813_v23 = vadd.f32 %v1809_v21, %v4400_v60  ;;  %v1825_v38 = vsel %vm983_vm0, %v1815_v30, -inf }
 0x8eb   : > { %v1819_v25 = vsel %vm983_vm0, %v1813_v23, -inf }
 0x961   : > { %v1561_v59 = vpop.xlane.xlu0 %1560 }
 0x962   : > { %v1571_v61 = vsub.f32 %v1555_v44, %v1561_v59 }
 0x964   : > { %v1575_v20 = vmul.f32 1.442695, %v1571_v61 }
 0x965   : > { %v1567_v31 = vpop.xlane.xlu0 %1566  ;;  %v1564_v62 = vpop.xlane.xlu1 %1563 }
 0x966   : > { %v1573_v63 = vsub.f32 %v1557_v51, %v1567_v31  ;;  %v1572_v0 = vsub.f32 %v1556_v53, %v1564_v62 }
 0x968   : > { %v1579_v32 = vmul.f32 1.442695, %v1573_v63  ;;  %v1577_v2 = vmul.f32 1.442695, %v1572_v0 }
 0x969   : > { %v1570_v37 = vpop.xlane.xlu0 %1569 }
 0x96a   : > { %3598 = vpow2.f32 %v1579_v32  ;;  %v1574_v1 = vsub.f32 %v1558_v57, %v1570_v37 }
 0x96b   : > { %3600 = vpow2.f32 %v1575_v20 }
 0x96c   : > { %v1581_v3 = vmul.f32 1.442695, %v1574_v1 }
 0x96e   : > { %3602 = vpow2.f32 %v1581_v3 }
 0x96f   : > { %3604 = vpow2.f32 %v1577_v2 }
 0x977   : > { %v3599_v4 = vpop.eup %3598 }
 0x978   : > { %v1589_v5 = vsel %vm983_vm0, %v3599_v4, 0.0  ;;  %v3601_v6 = vpop.eup %3600 }
 0x979   : > { %1590 = vadd.xlane.f32.xlu0 %v1589_v5  ;;  %v1583_v8 = vsel %vm983_vm0, %v3601_v6, 0.0 }
 0x97b   : > { %v3603_v7 = vpop.eup %3602 }
 0x97c   : > { %v1592_v9 = vsel %vm983_vm0, %v3603_v7, 0.0  ;;  %v3605_v14 = vpop.eup %3604 }
 0x97d   : > { %1584 = vadd.xlane.f32.xlu0 %v1583_v8  ;;  %1593 = vadd.xlane.f32.xlu1 %v1592_v9  ;;  %v1586_v15 = vsel %vm983_vm0, %v3605_v14, 0.0  ;;  %v3522_v9 = vld [vmem:[%s4302_s2 + $0x28] sm:$0xff]  }
 0x981   : > { %1587 = vadd.xlane.f32.xlu1 %v1586_v15  ;;  %v3280_v15 = vpop.f32.mrf.mxu1 }
 0x983   : > { %v1467_v16 = vpop.f32.mrf.mxu1 }
 0x985   : > { %v3281_v17 = vpop.f32.mrf.mxu1 }
 0x987   : > { %v1470_v18 = vpop.f32.mrf.mxu1 }
 0x992   : > { %1605 = vrot.lane.b32.xlu1 %v4417_v40, %s3969_s29 }
 0x993   : > { %1607 = vrot.lane.b32.xlu0 %v4409_v13, %s3969_s29 }
 0x9b2   : > { %1820 = vmax.xlane.f32.xlu0 %v1819_v25 }
 0x9b6   : > { %1823 = vmax.xlane.f32.xlu0 %v1822_v28  ;;  %1817 = vmax.xlane.f32.xlu1 %v1816_v29 }
 0x9ba   : > { %1826 = vmax.xlane.f32.xlu1 %v1825_v38 }
 0xa02   : > { %v1591_v60 = vpop.xlane.xlu0 %1590 }
 0xa06   : > { %v1585_v39 = vpop.xlane.xlu0 %1584  ;;  %v1594_v41 = vpop.xlane.xlu1 %1593 }
 0xa07   : > { %3606 = vrcp.f32 %v1594_v41 }
 0xa08   : > { %3608 = vrcp.f32 %v1585_v39 }
 0xa09   : > { %3610 = vrcp.f32 %v1591_v60 }
 0xa0a   : > { %v1608_v47 = vpop.permute.xlu0 %1607  ;;  %v1588_v50 = vpop.xlane.xlu1 %1587 }
 0xa0b   : > { %3612 = vrcp.f32 %v1588_v50  ;;  %3290 = vmatprep.subr.bf16.mxu1 %v1608_v47 }
 0xa0c   : > { %3291 = vmatpush3.bf16.msra.mxu1 %v1608_v47 }
 0xa0e   : > { %v1606_v42 = vpop.permute.xlu1 %1605 }
 0xa0f   : > { %3292 = vmatprep.subr.bf16.mxu1 %v1606_v42 }
 0xa10   : > { %3293 = vmatpush3.bf16.msra.mxu1 %v1606_v42 }
 0xa11   : > { %3298 = vmatprep.subr.bf16.mxu1 %v3522_v9 }
 0xa14   : > { %v3607_v55 = vpop.eup %3606 }
 0xa15   : > { %v3609_v43 = vpop.eup %3608  ;;  %v1602_v46 = vmul.f32 %v3607_v55, %v3603_v7 }
 0xa16   : > { %v3611_v44 = vpop.eup %3610  ;;  %v1599_v48 = vmul.f32 %v3609_v43, %v3601_v6  ;;  %v3524_v43 = vld [vmem:[%s4302_s2 + $0x38] sm:$0xff]  }
 0xa17   : > { %v1601_v51 = vmul.f32 %v3611_v44, %v3599_v4  ;;  %v3525_v44 = vld [vmem:[%s4302_s2 + $0x30] sm:$0xff]  }
 0xa18   : > { %v3613_v45 = vpop.eup %3612 }
 0xa19   : > { %v1600_v49 = vmul.f32 %v3613_v45, %v3605_v14  ;;  %v1604_v54 = vpack.c.bf16 %v1602_v46, %v1601_v51  ;;  %v3523_v14 = vld [vmem:[%s4302_s2 + $0x20] sm:$0xff]   ;;  %v1476_v45 = vadd.f32 %v3280_v15, %v4492_v33 }
 0xa1b   : > { %v1603_v53 = vpack.c.bf16 %v1600_v49, %v1599_v48  ;;  %v1468_v48 = vadd.f32 %v1467_v16, %v4494_v34  ;;  %v1998_v34 = vsub.s32 1, %v4351_v10  ;;  %v3663_v16 = vld [vmem:[#allocation2 + $0x8] sm:$0xff] }
 0xa1d   : > { %3294 = vmatprep.mubr.msk.bf16.mxu1 %vm983_vm0, %v1603_v53  ;;  %v1479_v53 = vadd.f32 %v3281_v17, %v4496_v35 }
 0xa1e   : > { %3295 = vmatmul.mubr.msk.bf16.vlgmr.msra.gmra.mxu1 %vm983_vm0, %v1604_v54 }
 0xa1f   : > { %3299 = vmatpush3.bf16.msra.mxu1 %v3522_v9 }
 0xa20   : > { %3300 = vmatprep.subr.bf16.mxu1 %v3523_v14 }
 0xa23   : > { %3301 = vmatpush3.bf16.msra.mxu1 %v3523_v14 }
 0xa3b   : > { %v1821_v56 = vpop.xlane.xlu0 %1820 }
 0xa3c   : > { %v1829_v31 = vsub.f32 %v1813_v23, %v1821_v56 }
 0xa3e   : > { %v1834_v0 = vmul.f32 1.442695, %v1829_v31 }
 0xa3f   : > { %v1824_v57 = vpop.xlane.xlu0 %1823  ;;  %v1818_v58 = vpop.xlane.xlu1 %1817 }
 0xa40   : > { %v1830_v59 = vsub.f32 %v1814_v26, %v1824_v57  ;;  %v1828_v61 = vsub.f32 %v1812_v27, %v1818_v58  ;;  %v1471_v57 = vadd.f32 %v1470_v18, %v4498_v36  ;;  %v3664_v18 = vld [vmem:[#allocation2] sm:$0xff] }
 0xa42   : > { %v1836_v62 = vmul.f32 1.442695, %v1830_v59  ;;  %v1832_v63 = vmul.f32 1.442695, %v1828_v61 }
 0xa43   : > { %v1827_v20 = vpop.xlane.xlu1 %1826 }
 0xa44   : > { %3614 = vpow2.f32 %v1836_v62  ;;  %v1831_v32 = vsub.f32 %v1815_v30, %v1827_v20 }
 0xa45   : > { %3616 = vpow2.f32 %v1832_v63 }
 0xa46   : > { %v1838_v37 = vmul.f32 1.442695, %v1831_v32 }
 0xa48   : > { %3618 = vpow2.f32 %v1838_v37  ;;  %v1999_v37 = vrot.slane %v4357_v12, %v1998_v34  ;;  %v3665_v12 = vld [vmem:[#allocation2 + $0x18] sm:$0xff] }
 0xa49   : > { %3620 = vpow2.f32 %v1834_v0 }
 0xa51   : > { %v3615_v1 = vpop.eup %3614 }
 0xa52   : > { %v1846_v2 = vsel %vm983_vm0, %v3615_v1, 0.0  ;;  %v3617_v3 = vpop.eup %3616 }
 0xa53   : > { %1847 = vadd.xlane.f32.xlu0 %v1846_v2  ;;  %v1840_v5 = vsel %vm983_vm0, %v3617_v3, 0.0 }
 0xa55   : > { %v3619_v4 = vpop.eup %3618 }
 0xa56   : > { %v1849_v6 = vsel %vm983_vm0, %v3619_v4, 0.0  ;;  %v3621_v7 = vpop.eup %3620 }
 0xa57   : > { %1841 = vadd.xlane.f32.xlu0 %v1840_v5  ;;  %1850 = vadd.xlane.f32.xlu1 %v1849_v6  ;;  %v1843_v8 = vsel %vm983_vm0, %v3621_v7, 0.0 }
 0xa5b   : > { %1844 = vadd.xlane.f32.xlu1 %v1843_v8  ;;  %v3662_v8 = vld [vmem:[#allocation2 + $0x10] sm:$0xff] }
 0xa6c   : > { %1862 = vrot.lane.b32.xlu1 %v4417_v40, %s3970_s14 }
 0xa6d   : > { %1864 = vrot.lane.b32.xlu0 %v4409_v13, %s3970_s14 }
 0xadc   : > { %v1848_v19 = vpop.xlane.xlu0 %1847 }
 0xade   : > { %v3296_v21 = vpop.f32.mrf.mxu1 }
 0xae0   : > { %v1651_v11 = vpop.f32.mrf.mxu1  ;;  %v1842_v22 = vpop.xlane.xlu0 %1841 }
 0xae1   : > { %v1851_v23 = vpop.xlane.xlu1 %1850 }
 0xae2   : > { %v3297_v24 = vpop.f32.mrf.mxu1  ;;  %3622 = vrcp.f32 %v1851_v23 }
 0xae3   : > { %3624 = vrcp.f32 %v1842_v22  ;;  %v1667_v28 = vpack.c.bf16 %v3297_v24, %v3296_v21  ;;  %v3528_v22 = vld [vmem:[%s4304_s15 + $0x74] ss:$8 sps:$4 sm:$0xff]  }
 0xae4   : > { %v1654_v25 = vpop.f32.mrf.mxu1  ;;  %v1865_v26 = vpop.permute.xlu0 %1864  ;;  %3626 = vrcp.f32 %v1848_v19  ;;  %2175 = vmatprep.subr.bf16.mxu0 %v3528_v22 }
 0xae5   : > { %v1666_v27 = vpack.c.bf16 %v1654_v25, %v1651_v11  ;;  %v1845_v40 = vpop.xlane.xlu1 %1844  ;;  %3314 = vmatprep.subr.bf16.mxu1 %v1865_v26  ;;  %v3526_v11 = vld [vmem:[%s4304_s15 + $0x70] ss:$8 sps:$4 sm:$0xff]  }
 0xae6   : > { %3628 = vrcp.f32 %v1845_v40  ;;  %2176 = vmatpush1.bf16.msra.mxu0 %v3526_v11 }
 0xae7   : > { %3302 = vmatprep.mubr.msk.bf16.mxu1 %vm983_vm0, %v1666_v27 }
 0xae8   : > { %3303 = vmatmul.mubr.msk.bf16.vlgmr.msra.gmra.mxu1 %vm983_vm0, %v1667_v28 }
 0xae9   : > { %3315 = vmatpush3.bf16.msra.mxu1 %v1865_v26  ;;  %v1863_v13 = vpop.permute.xlu1 %1862 }
 0xaea   : > { %3316 = vmatprep.subr.bf16.mxu1 %v1863_v13 }
 0xaed   : > { %3317 = vmatpush3.bf16.msra.mxu1 %v1863_v13 }
 0xaee   : > { %3322 = vmatprep.subr.bf16.mxu1 %v3524_v43 }
 0xaef   : > { %v3623_v29 = vpop.eup %3622 }
 0xaf0   : > { %v3625_v30 = vpop.eup %3624  ;;  %v1859_v39 = vmul.f32 %v3623_v29, %v3619_v4 }
 0xaf1   : > { %v3627_v38 = vpop.eup %3626  ;;  %v1856_v41 = vmul.f32 %v3625_v30, %v3617_v3 }
 0xaf2   : > { %v1858_v50 = vmul.f32 %v3627_v38, %v3615_v1 }
 0xaf3   : > { %v3629_v60 = vpop.eup %3628 }
 0xaf4   : > { %v1857_v47 = vmul.f32 %v3629_v60, %v3621_v7  ;;  %v1861_v55 = vpack.c.bf16 %v1859_v39, %v1858_v50 }
 0xaf6   : > { %v1860_v42 = vpack.c.bf16 %v1857_v47, %v1856_v41 }
 0xaf8   : > { %3318 = vmatprep.mubr.msk.bf16.mxu1 %vm983_vm0, %v1860_v42  ;;  %v3531_v42 = vld [vmem:[%s4304_s15 + $0x64] ss:$8 sps:$4 sm:$0xff]  }
 0xaf9   : > { %3319 = vmatmul.mubr.msk.bf16.vlgmr.msra.gmra.mxu1 %vm983_vm0, %v1861_v55  ;;  %v3529_v55 = vld [vmem:[%s4304_s15 + $0x60] ss:$8 sps:$4 sm:$0xff]   ;;  %2177 = vmatprep.subr.bf16.mxu0 %v3531_v42 }
 0xafa   : > { %3323 = vmatpush3.bf16.msra.mxu1 %v3524_v43  ;;  %2178 = vmatpush1.bf16.msra.mxu0 %v3529_v55  ;;  %v3534_v43 = vld [vmem:[%s4304_s15 + $0x54] ss:$8 sps:$4 sm:$0xff]   ;;  %v3564_v42 = vld [vmem:[%s4317_s16 + $0x40] sm:$0xff]  }
 0xafb   : > { %3324 = vmatprep.subr.bf16.mxu1 %v3525_v44  ;;  %2179 = vmatprep.subr.bf16.mxu0 %v3534_v43  ;;  %v3565_v55 = vld [vmem:[%s4317_s16] sm:$0xff]   ;;  %v2089_v43 = vsub.s32 4, %v4351_v10 }
 0xafe   : > { %3325 = vmatpush3.bf16.msra.mxu1 %v3525_v44  ;;  %v3532_v44 = vld [vmem:[%s4304_s15 + $0x50] ss:$8 sps:$4 sm:$0xff]  }
 0xaff   : > { %2180 = vmatpush1.bf16.msra.mxu0 %v3532_v44 }
 0xba8   : > { %v3304_v46 = vpop.f32.mrf.mxu1 }
 0xba9   : > { %v1737_v49 = vadd.f32 %v3304_v46, %v1476_v45  ;;  %v3537_v45 = vld [vmem:[%s4304_s15 + $0x44] ss:$8 sps:$4 sm:$0xff]   ;;  %v3535_v46 = vld [vmem:[%s4304_s15 + $0x40] ss:$8 sps:$4 sm:$0xff]  }
 0xbaa   : > { %v1720_v51 = vpop.f32.mrf.mxu1  ;;  %2181 = vmatprep.subr.bf16.mxu0 %v3537_v45  ;;  %v3667_v45 = vld [vmem:[%s4315_s26 + $0x8] sm:$0xff] }
 0xbab   : > { %v1735_v54 = vadd.f32 %v1720_v51, %v1468_v48  ;;  %2182 = vmatpush1.bf16.msra.mxu0 %v3535_v46  ;;  %v3538_v48 = vld [vmem:[%s4304_s15 + $0x30] ss:$8 sps:$4 sm:$0xff]   ;;  %v3543_v51 = vld [vmem:[%s4304_s15 + $0x24] ss:$8 sps:$4 sm:$0xff]   ;;  %v2094_v46 = vrot.slane %v3667_v45, %v2089_v43 }
 0xbac   : > { %v3305_v56 = vpop.f32.mrf.mxu1 }
 0xbad   : > { %v1738_v58 = vadd.f32 %v3305_v56, %v1479_v53  ;;  %v3541_v53 = vld [vmem:[%s4304_s15 + $0x20] ss:$8 sps:$4 sm:$0xff]   ;;  %v3544_v56 = vld [vmem:[%s4304_s15 + $0x10] ss:$8 sps:$4 sm:$0xff]  }
 0xbae   : > { %v1723_v59 = vpop.f32.mrf.mxu1 }
 0xbaf   : > { %v1736_v61 = vadd.f32 %v1723_v59, %v1471_v57  ;;  %v3549_v57 = vld [vmem:[%s4304_s15 + $0x4] ss:$8 sps:$4 sm:$0xff]  }
 0xbb9   : > { %v3320_v31 = vpop.f32.mrf.mxu1 }
 0xbbb   : > { %v1908_v62 = vpop.f32.mrf.mxu1 }
 0xbbd   : > { %v3321_v63 = vpop.f32.mrf.mxu1 }
 0xbbe   : > { %v1924_v33 = vpack.c.bf16 %v3321_v63, %v3320_v31 }
 0xbbf   : > { %v1911_v20 = vpop.f32.mrf.mxu1 }
 0xbc0   : > { %v1923_v32 = vpack.c.bf16 %v1911_v20, %v1908_v62 }
 0xbc2   : > { %3326 = vmatprep.mubr.msk.bf16.mxu1 %vm983_vm0, %v1923_v32 }
 0xbc3   : > { %3327 = vmatmul.mubr.msk.bf16.vlgmr.msra.gmra.mxu1 %vm983_vm0, %v1924_v33 }
 0xc83   : > { %v3328_v35 = vpop.f32.mrf.mxu1 }
 0xc84   : > { %v1994_v5 = vadd.f32 %v3328_v35, %v1737_v49  ;;  %v3540_v49 = vld [vmem:[%s4304_s15 + $0x34] ss:$8 sps:$4 sm:$0xff]  }
 0xc85   : > { %v1977_v0 = vpop.f32.mrf.mxu1  ;;  %2183 = vmatprep.subr.bf16.mxu0 %v3540_v49 }
 0xc86   : > { %v1992_v36 = vadd.f32 %v1977_v0, %v1735_v54  ;;  %v2002_v15 = vadd.f32 %v1999_v37, %v1994_v5  ;;  %2184 = vmatpush1.bf16.msra.mxu0 %v3538_v48  ;;  %v3546_v54 = vld [vmem:[%s4304_s15 + $0x14] ss:$8 sps:$4 sm:$0xff]   ;;  %v2063_v5 = vsub.s32 3, %v4351_v10 }
 0xc87   : > { %v3329_v1 = vpop.f32.mrf.mxu1  ;;  %2185 = vmatprep.subr.bf16.mxu0 %v3543_v51 }
 0xc88   : > { %v2000_v2 = vadd.f32 %v1999_v37, %v1992_v36  ;;  %v1995_v3 = vadd.f32 %v3329_v1, %v1738_v58  ;;  %v2006_v21 = vadd.f32 %v3665_v12, %v2002_v15  ;;  %v3547_v58 = vld [vmem:[%s4304_s15] ss:$8 sps:$4 sm:$0xff]   ;;  %v2055_v36 = vsub.s32 2, %v4351_v10 }
 0xc89   : > { %v1980_v4 = vpop.f32.mrf.mxu1 }
 0xc8a   : > { %v2003_v6 = vadd.f32 %v1999_v37, %v1995_v3  ;;  %v1993_v7 = vadd.f32 %v1980_v4, %v1736_v61  ;;  %v2004_v9 = vadd.f32 %v3662_v8, %v2000_v2  ;;  %2186 = vmatpush1.bf16.msra.mxu0 %v3541_v53  ;;  %v4585_v3 = vld [vmem:[%s4315_s26] sm:$0xff] }
 0xc8b   : > { %2187 = vmatprep.subr.bf16.mxu0 %v3546_v54  ;;  %v2056_v4 = vrot.slane %v4585_v3, %v2055_v36  ;;  %v2090_v44 = vrot.slane %v4585_v3, %v2089_v43 }
 0xc8c   : > { %v2001_v14 = vadd.f32 %v1999_v37, %v1993_v7  ;;  %2008 = vadd.xlane.f32.xlu1 %v2004_v9  ;;  %v2007_v17 = vadd.f32 %v3663_v16, %v2003_v6 }
 0xc8e   : > { %v2005_v19 = vadd.f32 %v3664_v18, %v2001_v14  ;;  %2188 = vmatpush1.bf16.msra.mxu0 %v3544_v56 }
 0xc8f   : > { %2189 = vmatprep.subr.bf16.mxu0 %v3549_v57 }
 0xc90   : > { %2014 = vadd.xlane.f32.xlu1 %v2007_v17  ;;  %2010 = vadd.xlane.f32.xlu0 %v2005_v19 }
 0xc92   : > { %2190 = vmatpush1.bf16.msra.mxu0 %v3547_v58 }
 0xc94   : > { %2012 = vadd.xlane.f32.xlu0 %v2006_v21 }
 0xd15   : > { %v2009_v23 = vpop.xlane.xlu1 %2008 }
 0xd16   : > { %v2017_v24 = vmul.f32 0.0078125, %v2009_v23 }
 0xd18   : > { %v4552_v25 = vsub.f32 %v2004_v9, %v2017_v24  ;;  %v2064_v9 = vrot.slane %v4585_v3, %v2063_v5 }
 0xd19   : > { %v2015_v26 = vpop.xlane.xlu1 %2014  ;;  %v2011_v27 = vpop.xlane.xlu0 %2010 }
 0xd1a   : > { %v2020_v40 = vmul.f32 0.0078125, %v2015_v26  ;;  %v2018_v28 = vmul.f32 0.0078125, %v2011_v27  ;;  %v2025_v13 = vmul.f32 %v4552_v25, %v4552_v25  ;;  %v3550_v26 = vld [vmem:[%s4317_s16 + $0x78] sm:$0xff]  }
 0xd1b   : > { %v3551_v27 = vld [vmem:[%s4317_s16 + $0x38] sm:$0xff]   ;;  %3170 = vmatprep.subr.bf16.mxu1 %v3550_v26 }
 0xd1c   : > { %v4556_v29 = vsub.f32 %v2005_v19, %v2018_v28  ;;  %2029 = vadd.xlane.f32.xlu0 %v2025_v13  ;;  %v4558_v38 = vsub.f32 %v2007_v17, %v2020_v40  ;;  %3171 = vmatpush3.bf16.msra.mxu1 %v3551_v27  ;;  %v3552_v40 = vld [vmem:[%s4317_s16 + $0x70] sm:$0xff]   ;;  %v3555_v13 = vld [vmem:[%s4317_s16 + $0x28] sm:$0xff]  }
 0xd1d   : > { %v2013_v30 = vpop.xlane.xlu0 %2012  ;;  %v3553_v28 = vld [vmem:[%s4317_s16 + $0x30] sm:$0xff]   ;;  %3172 = vmatprep.subr.bf16.mxu1 %v3552_v40 }
 0xd1e   : > { %v2019_v60 = vmul.f32 0.0078125, %v2013_v30  ;;  %v2026_v39 = vmul.f32 %v4556_v29, %v4556_v29  ;;  %v2028_v47 = vmul.f32 %v4558_v38, %v4558_v38  ;;  %v3557_v30 = vld [vmem:[%s4317_s16 + $0x20] sm:$0xff]  }
 0xd20   : > { %v4562_v41 = vsub.f32 %v2006_v21, %v2019_v60  ;;  %2031 = vadd.xlane.f32.xlu1 %v2026_v39  ;;  %3173 = vmatpush3.bf16.msra.mxu1 %v3553_v28  ;;  %v3559_v60 = vld [vmem:[%s4317_s16 + $0x18] sm:$0xff]   ;;  %v3560_v39 = vld [vmem:[%s4317_s16 + $0x50] sm:$0xff]  }
 0xd22   : > { %v2027_v50 = vmul.f32 %v4562_v41, %v4562_v41 }
 0xd24   : > { %2035 = vadd.xlane.f32.xlu1 %v2028_v47  ;;  %2033 = vadd.xlane.f32.xlu0 %v2027_v50  ;;  %v3562_v47 = vld [vmem:[%s4317_s16 + $0x48] sm:$0xff]  }
 0xd25   : > { %v3563_v50 = vld [vmem:[%s4317_s16 + $0x8] sm:$0xff]  }
 0xda5   : > { %v2030_v59 = vpop.xlane.xlu0 %2029 }
 0xda6   : > { %v2037_v61 = vmul.f32 0.0078125, %v2030_v59 }
 0xda8   : > { %v2041_v31 = vadd.f32 1e-12, %v2037_v61 }
 0xda9   : > { %v2032_v62 = vpop.xlane.xlu1 %2031 }
 0xdaa   : > { %3630 = vrsqrt.f32 %v2041_v31  ;;  %v2038_v63 = vmul.f32 0.0078125, %v2032_v62 }
 0xdac   : > { %v2042_v20 = vadd.f32 1e-12, %v2038_v63 }
 0xdad   : > { %v2036_v32 = vpop.xlane.xlu1 %2035  ;;  %v2034_v33 = vpop.xlane.xlu0 %2033 }
 0xdae   : > { %3632 = vrsqrt.f32 %v2042_v20  ;;  %v2040_v34 = vmul.f32 0.0078125, %v2036_v32  ;;  %v2039_v35 = vmul.f32 0.0078125, %v2034_v33 }
 0xdb0   : > { %v2044_v0 = vadd.f32 1e-12, %v2040_v34  ;;  %v2043_v37 = vadd.f32 1e-12, %v2039_v35 }
 0xdb2   : > { %3634 = vrsqrt.f32 %v2044_v0 }
 0xdb3   : > { %3636 = vrsqrt.f32 %v2043_v37 }
 0xdb7   : > { %v3631_v1 = vpop.eup %3630 }
 0xdb8   : > { %v2049_v2 = vmul.f32 %v3631_v1, %v4552_v25 }
 0xdba   : > { %v2057_v8 = vmul.f32 %v2056_v4, %v2049_v2 }
 0xdbb   : > { %v3633_v6 = vpop.eup %3632 }
 0xdbc   : > { %v2050_v7 = vmul.f32 %v3633_v6, %v4556_v29  ;;  %v4591_v17 = vadd.f32 %v2064_v9, %v2057_v8  ;;  %v3556_v29 = vld [vmem:[%s4317_s16 + $0x60] sm:$0xff]  }
 0xdbe   : > { %v2058_v14 = vmul.f32 %v2056_v4, %v2050_v7 }
 0xdbf   : > { %v3635_v15 = vpop.eup %3634 }
 0xdc0   : > { %v3637_v16 = vpop.eup %3636  ;;  %v4593_v18 = vadd.f32 %v2064_v9, %v2058_v14  ;;  %v2052_v19 = vmul.f32 %v3635_v15, %v4558_v38  ;;  %v3558_v38 = vld [vmem:[%s4317_s16 + $0x58] sm:$0xff]  }
 0xdc1   : > { %v2051_v12 = vmul.f32 %v3637_v16, %v4562_v41  ;;  %v3561_v41 = vld [vmem:[%s4317_s16 + $0x10] sm:$0xff]  }
 0xdc2   : > { %v2069_v21 = vpack.c.bf16 %v4593_v18, %v4591_v17  ;;  %v2060_v11 = vmul.f32 %v2056_v4, %v2052_v19 }
 0xdc3   : > { %v2059_v22 = vmul.f32 %v2056_v4, %v2051_v12 }
 0xdc4   : > { %2208 = vmatmul.mubr.bf16.vlgmr.msra.gmra.mxu0 %v2069_v21  ;;  %v4602_v24 = vadd.f32 %v2064_v9, %v2060_v11 }
 0xdc5   : > { %2217 = vmatprep.mubr.bf16.mxu0 %v3967_v52  ;;  %v4600_v23 = vadd.f32 %v2064_v9, %v2059_v22  ;;  %v3554_v52 = vld [vmem:[%s4317_s16 + $0x68] sm:$0xff]  }
 0xdc6   : > { %3174 = vmatprep.subr.bf16.mxu1 %v3554_v52 }
 0xdc7   : > { %v2070_v25 = vpack.c.bf16 %v4602_v24, %v4600_v23  ;;  %3175 = vmatpush3.bf16.msra.mxu1 %v3555_v13 }
 0xdc8   : > { %3176 = vmatprep.subr.bf16.mxu1 %v3556_v29 }
 0xdcb   : > { %3177 = vmatpush3.bf16.msra.mxu1 %v3557_v30 }
 0xdcc   : > { %2218 = vmatmul.mubr.bf16.gmra.mxu0 %v2070_v25  ;;  %3178 = vmatprep.subr.bf16.mxu1 %v3558_v38 }
 0xdcf   : > { %3179 = vmatpush3.bf16.msra.mxu1 %v3559_v60 }
 0xdd0   : > { %3180 = vmatprep.subr.bf16.mxu1 %v3560_v39 }
 0xdd3   : > { %3181 = vmatpush3.bf16.msra.mxu1 %v3561_v41 }
 0xdd4   : > { %3182 = vmatprep.subr.bf16.mxu1 %v3562_v47 }
 0xdd7   : > { %3183 = vmatpush3.bf16.msra.mxu1 %v3563_v50 }
 0xdd8   : > { %3184 = vmatprep.subr.bf16.mxu1 %v3564_v42 }
 0xddb   : > { %3185 = vmatpush3.bf16.msra.mxu1 %v3565_v55 }
 0xe84   : > { %v2209_v48 = vpop.f32.mrf.mxu0 }
 0xe85   : > { %v4625_v49 = vadd.f32 %v2209_v48, %v2090_v44 }
 0xe86   : > { %v2211_v51 = vpop.f32.mrf.mxu0 }
 0xe87   : > { %v2228_v53 = vmul.f32 %v4625_v49, %v4625_v49  ;;  %v4629_v54 = vadd.f32 %v2211_v51, %v2094_v46 }
 0xe88   : > { %v2213_v56 = vpop.f32.mrf.mxu0 }
 0xe89   : > { %v2236_v57 = vmul.f32 %v2228_v53, %v4625_v49  ;;  %v2229_v58 = vmul.f32 %v4629_v54, %v4629_v54  ;;  %v4634_v59 = vadd.f32 %v2213_v56, %v2090_v44 }
 0xe8a   : > { %v2215_v61 = vpop.f32.mrf.mxu0 }
 0xe8b   : > { %v2244_v31 = vmul.f32 0.044715, %v2236_v57  ;;  %v2237_v62 = vmul.f32 %v2229_v58, %v4629_v54  ;;  %v2230_v63 = vmul.f32 %v4634_v59, %v4634_v59  ;;  %v4639_v20 = vadd.f32 %v2215_v61, %v2094_v46 }
 0xe8c   : > { %v2219_v32 = vpop.f32.mrf.mxu0 }
 0xe8d   : > { %v2252_v33 = vadd.f32 %v2244_v31, %v4625_v49  ;;  %v2245_v34 = vmul.f32 0.044715, %v2237_v62  ;;  %v2238_v35 = vmul.f32 %v2230_v63, %v4634_v59  ;;  %v2231_v0 = vmul.f32 %v4639_v20, %v4639_v20 }
 0xe8e   : > { %v4645_v37 = vadd.f32 %v2219_v32, %v2090_v44  ;;  %v2221_v36 = vpop.f32.mrf.mxu0 }
 0xe8f   : > { %v2260_v1 = vmul.f32 0.7978846, %v2252_v33  ;;  %v2253_v2 = vadd.f32 %v2245_v34, %v4629_v54  ;;  %v2246_v4 = vmul.f32 0.044715, %v2238_v35  ;;  %v2239_v5 = vmul.f32 %v2231_v0, %v4639_v20 }
 0xe90   : > { %v2232_v6 = vmul.f32 %v4645_v37, %v4645_v37  ;;  %v4651_v7 = vadd.f32 %v2221_v36, %v2094_v46  ;;  %v2223_v8 = vpop.f32.mrf.mxu0 }
 0xe91   : > { %v2261_v9 = vmul.f32 0.7978846, %v2253_v2  ;;  %v2254_v14 = vadd.f32 %v2246_v4, %v4634_v59  ;;  %v2247_v15 = vmul.f32 0.044715, %v2239_v5  ;;  %3638 = vtanh.f32 %v2260_v1 }
 0xe92   : > { %v2240_v16 = vmul.f32 %v2232_v6, %v4645_v37  ;;  %v2233_v19 = vmul.f32 %v4651_v7, %v4651_v7  ;;  %v2224_v12 = vadd.f32 %v2223_v8, %v2090_v44  ;;  %v2225_v21 = vpop.f32.mrf.mxu0 }
 0xe93   : > { %3640 = vtanh.f32 %v2261_v9  ;;  %v2262_v11 = vmul.f32 0.7978846, %v2254_v14  ;;  %v2255_v22 = vadd.f32 %v2247_v15, %v4639_v20  ;;  %v2226_v25 = vadd.f32 %v2225_v21, %v2094_v46 }
 0xe94   : > { %v2248_v26 = vmul.f32 0.044715, %v2240_v16  ;;  %v2241_v27 = vmul.f32 %v2233_v19, %v4651_v7  ;;  %v2234_v40 = vmul.f32 %v2224_v12, %v2224_v12 }
 0xe95   : > { %3642 = vtanh.f32 %v2262_v11  ;;  %v2263_v28 = vmul.f32 0.7978846, %v2255_v22  ;;  %v2235_v52 = vmul.f32 %v2226_v25, %v2226_v25 }
 0xe96   : > { %v2256_v13 = vadd.f32 %v2248_v26, %v4645_v37  ;;  %v2249_v29 = vmul.f32 0.044715, %v2241_v27  ;;  %v2242_v30 = vmul.f32 %v2234_v40, %v2224_v12  ;;  %v2338_v26 = vsub.s32 5, %v4351_v10 }
 0xe97   : > { %3644 = vtanh.f32 %v2263_v28  ;;  %v2243_v38 = vmul.f32 %v2235_v52, %v2226_v25 }
 0xe98   : > { %v2264_v60 = vmul.f32 0.7978846, %v2256_v13  ;;  %v2257_v39 = vadd.f32 %v2249_v29, %v4651_v7  ;;  %v2250_v41 = vmul.f32 0.044715, %v2242_v30  ;;  %v2339_v40 = vrot.slane %v4585_v3, %v2338_v26 }
 0xe99   : > { %v2251_v47 = vmul.f32 0.044715, %v2243_v38 }
 0xe9a   : > { %3646 = vtanh.f32 %v2264_v60  ;;  %v2265_v50 = vmul.f32 0.7978846, %v2257_v39  ;;  %v2258_v42 = vadd.f32 %v2250_v41, %v2224_v12 }
 0xe9b   : > { %v2259_v55 = vadd.f32 %v2251_v47, %v2226_v25 }
 0xe9c   : > { %3648 = vtanh.f32 %v2265_v50  ;;  %v2266_v43 = vmul.f32 0.7978846, %v2258_v42 }
 0xe9d   : > { %v2267_v44 = vmul.f32 0.7978846, %v2259_v55 }
 0xe9e   : > { %3650 = vtanh.f32 %v2266_v43  ;;  %v3639_v45 = vpop.eup %3638 }
 0xe9f   : > { %3652 = vtanh.f32 %v2267_v44  ;;  %v2276_v53 = vadd.f32 1.0, %v3639_v45 }
 0xea0   : > { %v3641_v46 = vpop.eup %3640 }
 0xea1   : > { %v2277_v48 = vadd.f32 1.0, %v3641_v46  ;;  %v2284_v62 = vmul.f32 0.5, %v2276_v53 }
 0xea2   : > { %v3643_v51 = vpop.eup %3642 }
 0xea3   : > { %v2278_v56 = vadd.f32 1.0, %v3643_v51  ;;  %v2285_v31 = vmul.f32 0.5, %v2277_v48  ;;  %v2292_v36 = vmul.f32 %v2284_v62, %v4625_v49 }
 0xea4   : > { %v3645_v57 = vpop.eup %3644 }
 0xea5   : > { %v2286_v58 = vmul.f32 0.5, %v2278_v56  ;;  %v2279_v61 = vadd.f32 1.0, %v3645_v57  ;;  %v2293_v35 = vmul.f32 %v2285_v31, %v4629_v54 }
 0xea7   : > { %v3647_v63 = vpop.eup %3646  ;;  %v2287_v32 = vmul.f32 0.5, %v2279_v61  ;;  %v2294_v33 = vmul.f32 %v2286_v58, %v4634_v59 }
 0xea8   : > { %v2280_v2 = vadd.f32 1.0, %v3647_v63 }
 0xea9   : > { %v3649_v34 = vpop.eup %3648  ;;  %v2295_v0 = vmul.f32 %v2287_v32, %v4639_v20  ;;  %v2300_v8 = vpack.c.bf16 %v2294_v33, %v2292_v36 }
 0xeaa   : > { %v2281_v1 = vadd.f32 1.0, %v3649_v34  ;;  %v2288_v16 = vmul.f32 0.5, %v2280_v2 }
 0xeab   : > { %v3651_v4 = vpop.eup %3650  ;;  %v2301_v5 = vpack.c.bf16 %v2295_v0, %v2293_v35 }
 0xeac   : > { %v3653_v6 = vpop.eup %3652  ;;  %v2282_v9 = vadd.f32 1.0, %v3651_v4  ;;  %v2289_v15 = vmul.f32 0.5, %v2281_v1  ;;  %v2296_v49 = vmul.f32 %v2288_v16, %v4645_v37 }
 0xead   : > { %2468 = vmatprep.mubr.bf16.mxu1 %v2301_v5  ;;  %v2283_v14 = vadd.f32 1.0, %v3653_v6  ;;  %v2535_v6 = vsub.s32 6, %v4351_v10 }
 0xeae   : > { %2469 = vmatmul.mubr.bf16.vlgmr.msra.gmra.mxu1 %v2300_v8  ;;  %v2290_v59 = vmul.f32 0.5, %v2282_v9  ;;  %v2297_v54 = vmul.f32 %v2289_v15, %v4651_v7  ;;  %v2543_v9 = vsub.s32 7, %v4351_v10 }
 0xeaf   : > { %v2291_v19 = vmul.f32 0.5, %v2283_v14  ;;  %v2536_v15 = vrot.slane %v4585_v3, %v2535_v6 }
 0xeb0   : > { %v2298_v21 = vmul.f32 %v2290_v59, %v2224_v12  ;;  %v2544_v59 = vrot.slane %v4585_v3, %v2543_v9 }
 0xeb1   : > { %v2299_v20 = vmul.f32 %v2291_v19, %v2226_v25 }
 0xeb2   : > { %v2302_v22 = vpack.c.bf16 %v2298_v21, %v2296_v49 }
 0xeb3   : > { %v2303_v11 = vpack.c.bf16 %v2299_v20, %v2297_v54 }
 0xeb5   : > { %2476 = vmatprep.mubr.bf16.mxu1 %v2303_v11 }
 0xeb6   : > { %2477 = vmatmul.mubr.bf16.gmra.mxu1 %v2302_v22 }
 0xf6e   : > { %v3186_v27 = vpop.f32.mrf.mxu1 }
 0xf70   : > { %v3187_v28 = vpop.f32.mrf.mxu1 }
 0xf71   : > { %v3188_v52 = vadd.f32 %v3187_v28, %v3186_v27 }
 0xf72   : > { %v3189_v13 = vpop.f32.mrf.mxu1 }
 0xf73   : > { %v2471_v29 = vadd.f32 %v3188_v52, %v2339_v40 }
 0xf74   : > { %v3190_v30 = vpop.f32.mrf.mxu1 }
 0xf75   : > { %v3191_v12 = vadd.f32 %v3190_v30, %v3189_v13  ;;  %v2485_v7 = vadd.f32 %v2471_v29, %v4591_v17 }
 0xf76   : > { %v3192_v25 = vpop.f32.mrf.mxu1 }
 0xf77   : > { %v2474_v38 = vadd.f32 %v3191_v12, %v2339_v40  ;;  %2489 = vadd.xlane.f32.xlu0 %v2485_v7 }
 0xf78   : > { %v3193_v37 = vpop.f32.mrf.mxu1 }
 0xf79   : > { %v3194_v60 = vadd.f32 %v3193_v37, %v3192_v25  ;;  %v2486_v39 = vadd.f32 %v2474_v38, %v4593_v18 }
 0xf7a   : > { %v3195_v41 = vpop.f32.mrf.mxu1 }
 0xf7b   : > { %v2479_v47 = vadd.f32 %v3194_v60, %v2339_v40  ;;  %2491 = vadd.xlane.f32.xlu1 %v2486_v39 }
 0xf7c   : > { %v3196_v50 = vpop.f32.mrf.mxu1 }
 0xf7d   : > { %v3197_v42 = vadd.f32 %v3196_v50, %v3195_v41  ;;  %v2487_v55 = vadd.f32 %v2479_v47, %v4600_v23 }
 0xf7f   : > { %v2482_v43 = vadd.f32 %v3197_v42, %v2339_v40  ;;  %2493 = vadd.xlane.f32.xlu0 %v2487_v55 }
 0xf81   : > { %v2488_v44 = vadd.f32 %v2482_v43, %v4602_v24 }
 0xf83   : > { %2495 = vadd.xlane.f32.xlu1 %v2488_v44 }
0x1000   : > { %v2490_v17 = vpop.xlane.xlu0 %2489 }
0x1001   : > { %v2497_v45 = vmul.f32 0.0078125, %v2490_v17 }
0x1003   : > { %v2501_v46 = vsub.f32 %v2485_v7, %v2497_v45 }
0x1004   : > { %v2492_v48 = vpop.xlane.xlu1 %2491 }
0x1005   : > { %v2498_v51 = vmul.f32 0.0078125, %v2492_v48  ;;  %v2505_v53 = vmul.f32 %v2501_v46, %v2501_v46 }
0x1007   : > { %v2502_v56 = vsub.f32 %v2486_v39, %v2498_v51  ;;  %2509 = vadd.xlane.f32.xlu0 %v2505_v53 }
0x1008   : > { %v2494_v18 = vpop.xlane.xlu0 %2493 }
0x1009   : > { %v2499_v57 = vmul.f32 0.0078125, %v2494_v18  ;;  %v2506_v58 = vmul.f32 %v2502_v56, %v2502_v56 }
0x100b   : > { %v2503_v61 = vsub.f32 %v2487_v55, %v2499_v57  ;;  %2511 = vadd.xlane.f32.xlu1 %v2506_v58 }
0x100c   : > { %v2496_v31 = vpop.xlane.xlu1 %2495 }
0x100d   : > { %v2500_v23 = vmul.f32 0.0078125, %v2496_v31  ;;  %v2507_v62 = vmul.f32 %v2503_v61, %v2503_v61 }
0x100f   : > { %v2504_v63 = vsub.f32 %v2488_v44, %v2500_v23  ;;  %2513 = vadd.xlane.f32.xlu0 %v2507_v62 }
0x1011   : > { %v2508_v24 = vmul.f32 %v2504_v63, %v2504_v63 }
0x1013   : > { %2515 = vadd.xlane.f32.xlu1 %v2508_v24 }
0x1090   : > { %v2510_v32 = vpop.xlane.xlu0 %2509 }
0x1091   : > { %v2517_v33 = vmul.f32 0.0078125, %v2510_v32 }
0x1093   : > { %v2521_v34 = vadd.f32 1e-12, %v2517_v33 }
0x1094   : > { %v2512_v35 = vpop.xlane.xlu1 %2511 }
0x1095   : > { %3654 = vrsqrt.f32 %v2521_v34  ;;  %v2518_v0 = vmul.f32 0.0078125, %v2512_v35 }
0x1097   : > { %v2522_v36 = vadd.f32 1e-12, %v2518_v0 }
0x1098   : > { %v2514_v1 = vpop.xlane.xlu0 %2513 }
0x1099   : > { %3656 = vrsqrt.f32 %v2522_v36  ;;  %v2519_v2 = vmul.f32 0.0078125, %v2514_v1 }
0x109b   : > { %v2523_v4 = vadd.f32 1e-12, %v2519_v2 }
0x109c   : > { %v2516_v5 = vpop.xlane.xlu1 %2515 }
0x109d   : > { %3658 = vrsqrt.f32 %v2523_v4  ;;  %v2520_v8 = vmul.f32 0.0078125, %v2516_v5 }
0x109f   : > { %v2524_v14 = vadd.f32 1e-12, %v2520_v8 }
0x10a1   : > { %3660 = vrsqrt.f32 %v2524_v14 }
0x10a2   : > { %v3655_v16 = vpop.eup %3654 }
0x10a3   : > { %v2529_v19 = vmul.f32 %v3655_v16, %v2501_v46 }
0x10a5   : > { %v2537_v21 = vmul.f32 %v2536_v15, %v2529_v19 }
0x10a6   : > { %v3657_v54 = vpop.eup %3656 }
0x10a7   : > { %v2545_v20 = vadd.f32 %v2544_v59, %v2537_v21  ;;  %v2530_v49 = vmul.f32 %v3657_v54, %v2502_v56 }
0x10a9   : > { %2549 = vst [vmem:[#allocation2 + $0x10] sm:$0xff] %v2545_v20  ;;  %v2538_v11 = vmul.f32 %v2536_v15, %v2530_v49 }
0x10aa   : > { %v3659_v22 = vpop.eup %3658 }
0x10ab   : > { %v2546_v26 = vadd.f32 %v2544_v59, %v2538_v11  ;;  %v2531_v27 = vmul.f32 %v3659_v22, %v2503_v61 }
0x10ad   : > { %2550 = vst [vmem:[#allocation2] sm:$0xff] %v2546_v26  ;;  %v2539_v40 = vmul.f32 %v2536_v15, %v2531_v27 }
0x10ae   : > { %v3661_v10 = vpop.eup %3660 }
0x10af   : > { %v2547_v28 = vadd.f32 %v2544_v59, %v2539_v40  ;;  %v2532_v52 = vmul.f32 %v3661_v10, %v2504_v63 }
0x10b1   : > { %2551 = vst [vmem:[#allocation2 + $0x18] sm:$0xff] %v2547_v28  ;;  %v2540_v13 = vmul.f32 %v2536_v15, %v2532_v52  ;;  %2556 = sbr.rel (%p3085_p12) target bundleno = 4740 (0x1284), region = 104 }
0x10b3   : > { %v2548_v29 = vadd.f32 %v2544_v59, %v2540_v13 }
0x10b5   : > { %2552 = vst [vmem:[#allocation2 + $0x8] sm:$0xff] %v2548_v29 }
0x10b6   : > { %v3668_v3 = vld [vmem:[%s4802_s4 + $0x38] sm:$0xff]   ;;  %v2557_v30 = vpack.c.bf16 %v2546_v26, %v2545_v20  ;;  %v3669_v12 = vld [vmem:[%s4802_s4 + $0x30] sm:$0xff]   ;;  %v3670_v7 = vld [vmem:[%s4802_s4 + $0x28] sm:$0xff]   ;;  %v2558_v41 = vpack.c.bf16 %v2548_v29, %v2547_v28  ;;  %vm2745_vm5 = vcmask 523264  }
0x10b7   : > { %3330 = vmatprep.subr.bf16.mxu0 %v3668_v3  ;;  %v3671_v25 = vld [vmem:[%s4802_s4 + $0x20] sm:$0xff]   ;;  %v3672_v38 = vld [vmem:[%s4802_s4 + $0x18] sm:$0xff]   ;;  %v3673_v37 = vld [vmem:[%s4802_s4 + $0x10] sm:$0xff]  }
0x10b8   : > { %3346 = vmatprep.mubr.bf16.mxu0 %v2557_v30  ;;  %3331 = vmatpush3.bf16.msra.mxu0 %v3668_v3  ;;  %v3674_v60 = vld [vmem:[%s4802_s4 + $0x8] sm:$0xff]   ;;  %v3675_v39 = vld [vmem:[%s4802_s4] sm:$0xff]   ;;  %v3676_v47 = vld [vmem:[%s4803_s24 + $0x18] sm:$0xff]  }
0x10b9   : > { %3332 = vmatprep.subr.bf16.mxu0 %v3669_v12  ;;  %3350 = vmatprep.subr.bf16.mxu1 %v3676_v47  ;;  %v3677_v50 = vld [vmem:[%s4804_s12 + $0x10] sm:$0xff]   ;;  %v3678_v42 = vld [vmem:[%s4804_s12 + $0x8] sm:$0xff]   ;;  %v3679_v55 = vld [vmem:[%s4804_s12] sm:$0xff]  }
0x10ba   : > { %3351 = vmatpush3.bf16.msra.mxu1 %v3676_v47  ;;  %v3086_v43 = vld [vmem:[%s4805_s8] ss:$0 sm:$0xff] }
0x10bb   : > { %3352 = vmatprep.subr.bf16.mxu1 %v3677_v50 }
0x10bc   : > { %3333 = vmatpush3.bf16.msra.mxu0 %v3669_v12 }
0x10bd   : > { %3334 = vmatprep.subr.bf16.mxu0 %v3670_v7 }
0x10be   : > { %3353 = vmatpush3.bf16.msra.mxu1 %v3677_v50 }
0x10bf   : > { %3354 = vmatprep.subr.bf16.mxu1 %v3678_v42 }
0x10c0   : > { %3335 = vmatpush3.bf16.msra.mxu0 %v3670_v7 }
0x10c1   : > { %3336 = vmatprep.subr.bf16.mxu0 %v3671_v25 }
0x10c2   : > { %3355 = vmatpush3.bf16.msra.mxu1 %v3678_v42 }
0x10c3   : > { %3356 = vmatprep.subr.bf16.mxu1 %v3679_v55 }
0x10c4   : > { %3337 = vmatpush3.bf16.msra.mxu0 %v3671_v25 }
0x10c5   : > { %3338 = vmatprep.subr.bf16.mxu0 %v3672_v38 }
0x10c6   : > { %3357 = vmatpush3.bf16.msra.mxu1 %v3679_v55 }
0x10c8   : > { %3339 = vmatpush3.bf16.msra.mxu0 %v3672_v38 }
0x10c9   : > { %3340 = vmatprep.subr.bf16.mxu0 %v3673_v37 }
0x10cc   : > { %3341 = vmatpush3.bf16.msra.mxu0 %v3673_v37 }
0x10cd   : > { %3342 = vmatprep.subr.bf16.mxu0 %v3674_v60 }
0x10d0   : > { %3343 = vmatpush3.bf16.msra.mxu0 %v3674_v60 }
0x10d1   : > { %3344 = vmatprep.subr.bf16.mxu0 %v3675_v39 }
0x10d4   : > { %3345 = vmatpush3.bf16.msra.mxu0 %v3675_v39 }
0x10d7   : > { %3347 = vmatmul.mubr.bf16.vlgmr.msra.gmra.mxu0 %v2558_v41 }
0x1197   : > { %v3348_v44 = vpop.f32.mrf.mxu0 }
0x1198   : > { %v2673_v17 = vadd.f32 %v3348_v44, %v3086_v43 }
0x1199   : > { %v2664_v45 = vpop.f32.mrf.mxu0 }
0x119a   : > { %v2685_v46 = vmin.f32 %v2673_v17, 0.0  ;;  %v2665_v48 = vadd.f32 %v3086_v43, %v2664_v45  ;;  %vm2681_vm3 = vcmp.gt.f32.partialorder %v2673_v17, 0.0 }
0x119b   : > { %v3349_v51 = vpop.f32.mrf.mxu0 }
0x119c   : > { %v2691_v53 = vmul.f32 1.442695, %v2685_v46  ;;  %v2683_v56 = vmin.f32 %v2665_v48, 0.0  ;;  %v2676_v18 = vadd.f32 %v3349_v51, %v3086_v43  ;;  %vm2679_vm2 = vcmp.gt.f32.partialorder %v2665_v48, 0.0 }
0x119d   : > { %v2667_v57 = vpop.f32.mrf.mxu0 }
0x119e   : > { %3680 = vpow2.f32 %v2691_v53  ;;  %v2687_v58 = vmul.f32 1.442695, %v2683_v56  ;;  %v2686_v61 = vmin.f32 %v2676_v18, 0.0  ;;  %v2668_v31 = vadd.f32 %v3086_v43, %v2667_v57 }
0x119f   : > { %vm2682_vm1 = vcmp.gt.f32.partialorder %v2676_v18, 0.0 }
0x11a0   : > { %3682 = vpow2.f32 %v2687_v58  ;;  %v2693_v23 = vmul.f32 1.442695, %v2686_v61  ;;  %v2684_v62 = vmin.f32 %v2668_v31, 0.0  ;;  %vm2680_vm4 = vcmp.gt.f32.partialorder %v2668_v31, 0.0 }
0x11a2   : > { %3684 = vpow2.f32 %v2693_v23  ;;  %v2689_v63 = vmul.f32 1.442695, %v2684_v62 }
0x11a4   : > { %3686 = vpow2.f32 %v2689_v63 }
0x11ab   : > { %v3681_v24 = vpop.eup %3680 }
0x11ac   : > { %v3097_v33 = vadd.f32 -1.0, %v3681_v24 }
0x11ad   : > { %v3683_v32 = vpop.eup %3682 }
0x11ae   : > { %v3095_v34 = vadd.f32 -1.0, %v3683_v32  ;;  %v2701_v2 = vmul.f32 1.6732632, %v3097_v33 }
0x11af   : > { %v3685_v35 = vpop.eup %3684 }
0x11b0   : > { %v3098_v0 = vadd.f32 -1.0, %v3685_v35  ;;  %v2699_v36 = vmul.f32 1.6732632, %v3095_v34  ;;  %v2705_v14 = vsel %vm2681_vm3, %v2673_v17, %v2701_v2 }
0x11b1   : > { %v3687_v1 = vpop.eup %3686  ;;  %v2709_v21 = vmul.f32 1.050701, %v2705_v14 }
0x11b2   : > { %v2702_v4 = vmul.f32 1.6732632, %v3098_v0  ;;  %v3096_v5 = vadd.f32 -1.0, %v3687_v1  ;;  %v2703_v9 = vsel %vm2679_vm2, %v2665_v48, %v2699_v36 }
0x11b3   : > { %v2707_v59 = vmul.f32 1.050701, %v2703_v9 }
0x11b4   : > { %v2706_v6 = vsel %vm2682_vm1, %v2676_v18, %v2702_v4  ;;  %v2700_v8 = vmul.f32 1.6732632, %v3096_v5 }
0x11b5   : > { %v2710_v15 = vmul.f32 1.050701, %v2706_v6 }
0x11b6   : > { %v2704_v16 = vsel %vm2680_vm4, %v2668_v31, %v2700_v8 }
0x11b7   : > { %v2708_v19 = vmul.f32 1.050701, %v2704_v16  ;;  %v2712_v20 = vpack.c.bf16 %v2710_v15, %v2709_v21 }
0x11b9   : > { %v2711_v54 = vpack.c.bf16 %v2708_v19, %v2707_v59 }
0x11bb   : > { %3358 = vmatprep.mubr.msk.bf16.mxu1 %vm2745_vm5, %v2711_v54 }
0x11bc   : > { %3359 = vmatmul.mubr.msk.bf16.vlgmr.msra.gmra.mxu1 %vm2745_vm5, %v2712_v20 }
0x127c   : > { %v3360_v49 = vpop.f32.mrf.mxu1 }
0x127d   : > { %2803 = vst [vmem:[#allocation15 + $0x10] sm:$0xff] %v3360_v49 }
0x127e   : > { %v2786_v11 = vpop.f32.mrf.mxu1 }
0x127f   : > { %2801 = vst [vmem:[#allocation15] sm:$0xff] %v2786_v11 }
0x1280   : > { %v3361_v22 = vpop.f32.mrf.mxu1 }
0x1281   : > { %2804 = vst [vmem:[#allocation15 + $0x18] sm:$0xff] %v3361_v22 }
0x1282   : > { %v2789_v26 = vpop.f32.mrf.mxu1 }
0x1283   : > { %2802 = vst [vmem:[#allocation15 + $0x8] sm:$0xff] %v2789_v26 }
0x1284 PF: > { %p3428_p6 = scmp.eq.s32.totalorder %s4058_s25, 1  ;;  %s3971_s30 = smov [#allocation15]  }
0x1285   : > { %s2811_s27 = sshll.u32 %s3971_s30, 4  ;;  %s2812_s27 = int_to_ptr.vmem [resolvable:$true] %s2811_s27 }
0x1286   : > { %s3878_s6 = scalar_lea.vmem %s2812_s27, 512  ;;  %p3885_p13 = scmp.lt.s32.totalorder %s2812_s27, %s2812_s27 }
0x1287   : > { %p3879_p7 = scmp.ne.s32.totalorder %s2812_s27, %s3878_s6  ;;  %p3886_p2 = scmp.lt.s32.totalorder %s3878_s6, %s3878_s6 }
0x1289   : > { %p3880_p11 = pnand %p3879_p7, %p3428_p6  ;;  %p3887_p3 = por %p3886_p2, %p3885_p13 }
0x128b   : > { %p3881_p1 = pneg %p3880_p11 }
0x128d   : > { %p3888_p5 = pnand %p3887_p3, %p3881_p1 }
0x128f   : > { %3891 = shalt.err (!%p3888_p5)
}
0x1290   : > { %s3972_s19 = smov 128   ;;  %s3973_s26 = smov 8  }
0x1291   : > { %s4806_s23 = sld [smem:[#allocation32_spill]] }
0x1297   : > { %3395 = dma.vmem_to_hbm [thread:$0]  (%p3428_p6), %s2812_s27, 512, %s4806_s23, [#allocation5], %s3972_s19, %s3972_s19, %s3973_s26  }
0x1298   : > { %3935 = dma.done.wait (%p3428_p6), [#allocation5], 512  }
0x1299   : > { %3937 = vsyncadd (%p3428_p6), [#allocation5], 4294966784 }
0x129a PF: > { %s4807_s24 = sld [smem:[#allocation22_spill]]  ;;  %s4810_s21 = smov %s3944_s22 }
0x129b   : > { %s4808_s13 = sld [smem:[#allocation21_spill]] }
0x129c   : > { %s4809_s23 = sld [smem:[#allocation23_spill]] }
0x12a0   : > { %p28_p8 = scmp.ge.s32.totalorder %s4807_s24, 4  }
0x12a1   : > { %s4811_s22 = smov %s4808_s13 }
0x12a2   :  { %30 = sbr.rel (!%p28_p8) target bundleno = 18 (0x12), region = 164 }
0x12a7   :  { %2827 = vsyncpa [#allocation4], 1 }
0x12a8   :  { %2829 = vsyncpa [#allocation4 + $0x1], 1 }
0x12a9   :  { %2830 = vsyncpa [#allocation7], 1 }
0x12aa   :  { %2831 = vsyncpa [#allocation10], 1 }
0x12ab   :  { %2833 = vsyncpa [#allocation10 + $0x1], 1 }
0x12ac   :  { %2834 = vsyncpa [#allocation13], 1 }
0x12ad   :  { %2836 = vsyncpa [#allocation13 + $0x1], 1 }
0x12ae   :  { %2837 = vsyncpa [#allocation5], 1 }
0x12af   :  { %2839 = vsyncpa [#allocation5 + $0x1], 1 }

</bundles_post_ra>
